<compile_context>
chip_gen: v6e
topology: v6e:2x2x1
jax: 0.10.0
libtpu: 0.0.40
codegen_flags: <defaults>
</compile_context>

<pallas_src>
import functools

import jax
import jax.numpy as jnp
from jax.experimental import pallas as pl
from jax.experimental.pallas import tpu as pltpu


# -----------------------------------------------------------------------------
# Pallas kernel: whole sequence in one invocation (time loop unrolled in-kernel).
# -----------------------------------------------------------------------------
def _decoder_kernel(H_ref, L_ref, Wg_ref, W1_ref, W2_ref, p_ref, out_ref,
                    *, K, seq_len, cin, D, Hh, Cout):
    L = L_ref[...]            # (N, N)          dense scaled Laplacian
    Wg = Wg_ref[...]          # (K*(cin+D), 4D) fused gate weights (x & h, all gates, all K)
    W1 = W1_ref[...]          # (D, Hh)         head Linear 1 with BN folded in
    W2 = W2_ref[...]          # (Hh, Cout)      head Linear 2
    slab = p_ref[...]         # (8, >=128)      packed small params

    gate_b = slab[0:1, 0:4 * D]     # (1, 4D) fused bias bx+bh+bg
    wc_i = slab[1:2, 0:D]           # (1, D)  peephole i
    wc_f = slab[2:3, 0:D]           # (1, D)  peephole f
    wc_o = slab[3:4, 0:D]           # (1, D)  peephole o
    b1 = slab[4:5, 0:Hh]            # (1, Hh) head bias 1 (BN folded)
    b2 = slab[5:6, 0:Cout]          # (1, Cout)

    N = L.shape[0]
    h = jnp.zeros((N, D), jnp.float32)
    c = jnp.zeros((N, D), jnp.float32)

    hs = []
    for t in range(seq_len):        # static unroll (seq_len small)
        x = H_ref[t]                                        # (N, cin)
        xh = jnp.concatenate([x, h], axis=1)                # (N, cin+D)

        # Fused Chebyshev recurrence on [x | h]:  T0 = xh, T1 = L xh, Tk = 2 L T{k-1} - T{k-2}
        terms = [xh]
        if K > 1:
            terms.append(jnp.dot(L, xh, preferred_element_type=jnp.float32))
        for _ in range(2, K):
            terms.append(2.0 * jnp.dot(L, terms[-1],
                                       preferred_element_type=jnp.float32) - terms[-2])
        xh_cheb = terms[0] if K == 1 else jnp.concatenate(terms, axis=1)  # (N, K*(cin+D))

        # One wide matmul for all 4 gates (i, f, c, o), both x- and h-paths, all K orders.
        pre = jnp.dot(xh_cheb, Wg, preferred_element_type=jnp.float32) + gate_b  # (N, 4D)

        pi = pre[:, 0 * D:1 * D]
        pf = pre[:, 1 * D:2 * D]
        pg = pre[:, 2 * D:3 * D]
        po = pre[:, 3 * D:4 * D]

        gate_i = jax.nn.sigmoid(pi + wc_i * c)
        gate_f = jax.nn.sigmoid(pf + wc_f * c)
        cand = jnp.tanh(pg)
        c = gate_f * c + gate_i * cand
        gate_o = jax.nn.sigmoid(po + wc_o * c)
        h = gate_o * jnp.tanh(c)
        hs.append(h)

    # Head hoisted out of the time loop: operate on all timesteps at once.
    # tanh -> (BatchNorm folded into W1/b1) -> Dropout(eval=id) -> Linear -> ReLU -> Linear -> Sigmoid
    A = jnp.tanh(jnp.concatenate(hs, axis=0))                               # (seq_len*N, D)
    Z1 = jnp.maximum(jnp.dot(A, W1, preferred_element_type=jnp.float32) + b1, 0.0)
    Z2 = jnp.dot(Z1, W2, preferred_element_type=jnp.float32) + b2
    out_ref[...] = jax.nn.sigmoid(Z2)                                       # (seq_len*N, Cout)


# -----------------------------------------------------------------------------
# Glue: dense scaled Laplacian from edge_index (PyG ChebConv, sym, lambda_max=2).
# -----------------------------------------------------------------------------
def scaled_laplacian_dense(edge_index, num_nodes):
    row, col = edge_index[0], edge_index[1]
    A = jnp.zeros((num_nodes, num_nodes), jnp.float32).at[row, col].add(1.0)
    deg = A.sum(axis=1)
    dinv = jnp.where(deg > 0, jax.lax.rsqrt(deg), 0.0)
    A_norm = dinv[:, None] * A * dinv[None, :]
    # L = I - A_norm;  L_hat = 2*L/lambda_max - I = -A_norm  (lambda_max = 2.0)
    return -A_norm


# -----------------------------------------------------------------------------
# Host-side parameter repacking / constant folding.
# -----------------------------------------------------------------------------
def pack_params(params, *, K, cin, D, Hh, Cout):
    Wx, Wh = params["Wx"], params["Wh"]           # (4,K,cin,D), (4,K,D,D)

    # Fused gate weight: rows = [T_k(x)-block ; T_k(h)-block] for k=0..K-1,
    # columns = [gate_i | gate_f | gate_c | gate_o] each of width D.
    blocks = []
    for k in range(K):
        wx_k = jnp.transpose(Wx[:, k], (1, 0, 2)).reshape(cin, 4 * D)   # (cin, 4D)
        wh_k = jnp.transpose(Wh[:, k], (1, 0, 2)).reshape(D, 4 * D)     # (D, 4D)
        blocks.append(jnp.concatenate([wx_k, wh_k], axis=0))            # (cin+D, 4D)
    W_big = jnp.concatenate(blocks, axis=0)                             # (K*(cin+D), 4D)

    # Fold the three per-gate biases into one.
    gate_b = (params["bx"] + params["bh"] + params["bg"]).reshape(4 * D)

    # Fold eval-mode BatchNorm into the first head Linear.
    bn_scale, bn_shift = params["bn"][0], params["bn"][1]               # (D,), (D,)
    W1f = bn_scale[:, None] * params["W1"]                              # (D, Hh)
    b1f = bn_shift @ params["W1"] + params["b1"][0]                     # (Hh,)

    # Pack all small vectors into one lane-dense slab.
    width = max(128, -(-max(4 * D, Hh, Cout) // 128) * 128)
    slab = jnp.zeros((8, width), jnp.float32)
    slab = slab.at[0, :4 * D].set(gate_b)
    slab = slab.at[1, :D].set(params["wc"][0])
    slab = slab.at[2, :D].set(params["wc"][1])
    slab = slab.at[3, :D].set(params["wc"][2])
    slab = slab.at[4, :Hh].set(b1f)
    slab = slab.at[5, :Cout].set(params["b2"][0])
    return W_big, W1f, params["W2"], slab


# -----------------------------------------------------------------------------
# Wrapper
# -----------------------------------------------------------------------------
def decoder_forward(H, edge_index, params, *, K):
    """H: (seq_len, num_nodes, linear_dim); returns (num_nodes, num_channels, seq_len)."""
    seq_len, num_nodes, cin = H.shape
    D = params["Wh"].shape[-1]
    Hh = params["W1"].shape[-1]
    Cout = params["W2"].shape[-1]

    L_hat = scaled_laplacian_dense(edge_index, num_nodes)
    W_big, W1f, W2, slab = pack_params(params, K=K, cin=cin, D=D, Hh=Hh, Cout=Cout)

    full = lambda shape: pl.BlockSpec(shape, lambda i, _n=len(shape): (0,) * _n)

    out_flat = pl.pallas_call(
        functools.partial(_decoder_kernel, K=K, seq_len=seq_len, cin=cin,
                          D=D, Hh=Hh, Cout=Cout),
        out_shape=jax.ShapeDtypeStruct((seq_len * num_nodes, Cout), jnp.float32),
        grid_spec=pltpu.PrefetchScalarGridSpec(
            num_scalar_prefetch=0,
            grid=(1,),
            in_specs=[
                full(H.shape),        # (seq_len, N, cin)
                full(L_hat.shape),    # (N, N)
                full(W_big.shape),    # (K*(cin+D), 4D)
                full(W1f.shape),      # (D, Hh)
                full(W2.shape),       # (Hh, Cout)
                full(slab.shape),     # (8, 128) packed small params
            ],
            out_specs=pl.BlockSpec((seq_len * num_nodes, Cout), lambda i: (0, 0)),
        ),
        compiler_params=pltpu.CompilerParams(dimension_semantics=("arbitrary",)),
    )(H, L_hat, W_big, W1f, W2, slab)

    # (seq_len*N, Cout) -> (N, Cout, seq_len)  to match the PyTorch return layout.
    out = out_flat.reshape(seq_len, num_nodes, Cout)
    return jnp.transpose(out, (1, 2, 0))


# -----------------------------------------------------------------------------
# Pure-JAX reference (unfused math, unfolded params) for a correctness check.
# -----------------------------------------------------------------------------
def decoder_reference(H, edge_index, params, *, K):
    seq_len, num_nodes, _ = H.shape
    D = params["Wh"].shape[-1]
    L = scaled_laplacian_dense(edge_index, num_nodes)
    Wx, bx = params["Wx"], params["bx"]
    Wh, bh = params["Wh"], params["bh"]
    wc, bg, bn = params["wc"], params["bg"], params["bn"]
    W1, b1, W2, b2 = params["W1"], params["b1"], params["W2"], params["b2"]

    def cheb_basis(v):
        basis = [v]
        if K > 1:
            basis.append(L @ v)
        for _ in range(2, K):
            basis.append(2.0 * (L @ basis[-1]) - basis[-2])
        return basis

    h = jnp.zeros((num_nodes, D), jnp.float32)
    c = jnp.zeros((num_nodes, D), jnp.float32)
    outs = []
    for t in range(seq_len):
        tx = cheb_basis(H[t])
        th = cheb_basis(h)

        def gate_pre(g):
            z = bx[g][None, :] + bh[g][None, :]
            for k in range(K):
                z = z + tx[k] @ Wx[g, k] + th[k] @ Wh[g, k]
            return z

        gi = jax.nn.sigmoid(gate_pre(0) + wc[0][None, :] * c + bg[0][None, :])
        gf = jax.nn.sigmoid(gate_pre(1) + wc[1][None, :] * c + bg[1][None, :])
        cc = jnp.tanh(gate_pre(2) + bg[2][None, :])
        c = gf * c + gi * cc
        go = jax.nn.sigmoid(gate_pre(3) + wc[2][None, :] * c + bg[3][None, :])
        h = go * jnp.tanh(c)

        a = jnp.tanh(h)
        y = a * bn[0][None, :] + bn[1][None, :]
        z1 = jnp.maximum(y @ W1 + b1, 0.0)
        z2 = z1 @ W2 + b2
        outs.append(jax.nn.sigmoid(z2))
    return jnp.transpose(jnp.stack(outs, axis=0), (1, 2, 0))


# -----------------------------------------------------------------------------
# Deterministic parameter construction + demo run
# -----------------------------------------------------------------------------
def make_params(key, *, linear_dim, conv_dim, num_channels, K):
    hidden = (conv_dim + num_channels) // 2
    ks = jax.random.split(key, 12)
    sc = 0.2
    params = {
        "Wx": sc * jax.random.normal(ks[0], (4, K, linear_dim, conv_dim), jnp.float32),
        "bx": sc * jax.random.normal(ks[1], (4, conv_dim), jnp.float32),
        "Wh": sc * jax.random.normal(ks[2], (4, K, conv_dim, conv_dim), jnp.float32),
        "bh": sc * jax.random.normal(ks[3], (4, conv_dim), jnp.float32),
        "wc": sc * jax.random.normal(ks[4], (3, conv_dim), jnp.float32),   # peephole i,f,o
        "bg": sc * jax.random.normal(ks[5], (4, conv_dim), jnp.float32),   # b_i,b_f,b_c,b_o
        "W1": sc * jax.random.normal(ks[6], (conv_dim, hidden), jnp.float32),
        "b1": sc * jax.random.normal(ks[7], (1, hidden), jnp.float32),
        "W2": sc * jax.random.normal(ks[8], (hidden, num_channels), jnp.float32),
        "b2": sc * jax.random.normal(ks[9], (1, num_channels), jnp.float32),
    }
    # Eval-mode BatchNorm1d(conv_dim): running_mean=0, running_var=1, eps=1e-5.
    gamma = 1.0 + 0.1 * jax.random.normal(ks[10], (conv_dim,), jnp.float32)
    beta = 0.1 * jax.random.normal(ks[11], (conv_dim,), jnp.float32)
    eps = 1e-5
    scale = gamma / jnp.sqrt(1.0 + eps)
    shift = beta - 0.0 * scale
    params["bn"] = jnp.stack([scale, shift], axis=0)   # (2, conv_dim)
    return params


if __name__ == "__main__":
    seq_len, num_nodes = 8, 16
    linear_dim, conv_dim, num_channels = 8, 16, 4
    K_cheb = 2

    key = jax.random.PRNGKey(0)
    k_in, k_par = jax.random.split(key)

    H = jax.random.normal(k_in, (seq_len, num_nodes, linear_dim), jnp.float32)

    # ring graph (undirected)
    src = jnp.arange(num_nodes, dtype=jnp.int32)
    dst = (src + 1) % num_nodes
    edge_index = jnp.stack([jnp.concatenate([src, dst]),
                            jnp.concatenate([dst, src])], axis=0)   # (2, 2*num_nodes)

    params = make_params(k_par, linear_dim=linear_dim, conv_dim=conv_dim,
                         num_channels=num_channels, K=K_cheb)

    out = decoder_forward(H, edge_index, params, K=K_cheb)
    out = jax.block_until_ready(out)
    assert out.shape == (num_nodes, num_channels, seq_len), out.shape

    ref = jax.block_until_ready(decoder_reference(H, edge_index, params, K=K_cheb))
    assert jnp.allclose(out, ref, atol=1e-4, rtol=1e-4), (
        float(jnp.max(jnp.abs(out - ref))))

    print("KERNEL_OK")
</pallas_src>

<mosaic_0001>
module attributes {stable_mosaic.version = 11 : i64} {
  func.func @_decoder_kernel(%arg0: i32, %arg1: memref<8x16x8xf32, #tpu.memory_space<vmem>>, %arg2: memref<16x16xf32, #tpu.memory_space<vmem>>, %arg3: memref<48x64xf32, #tpu.memory_space<vmem>>, %arg4: memref<16x10xf32, #tpu.memory_space<vmem>>, %arg5: memref<10x4xf32, #tpu.memory_space<vmem>>, %arg6: memref<8x128xf32, #tpu.memory_space<vmem>>, %arg7: memref<128x4xf32, #tpu.memory_space<vmem>>) attributes {dimension_semantics = [#tpu.dimension_semantics<arbitrary>], iteration_bounds = array<i64: 1>, scalar_prefetch = 0 : i64, scratch_operands = 0 : i64, tpu.core_type = #tpu.core_type<tc>, window_params = [{pipeline_mode = #tpu.pipeline_mode<synchronous>, transform_indices = @transform_0, window_bounds = array<i64: 8, 16, 8>}, {pipeline_mode = #tpu.pipeline_mode<synchronous>, transform_indices = @transform_1, window_bounds = array<i64: 16, 16>}, {pipeline_mode = #tpu.pipeline_mode<synchronous>, transform_indices = @transform_2, window_bounds = array<i64: 48, 64>}, {pipeline_mode = #tpu.pipeline_mode<synchronous>, transform_indices = @transform_3, window_bounds = array<i64: 16, 10>}, {pipeline_mode = #tpu.pipeline_mode<synchronous>, transform_indices = @transform_4, window_bounds = array<i64: 10, 4>}, {pipeline_mode = #tpu.pipeline_mode<synchronous>, transform_indices = @transform_5, window_bounds = array<i64: 8, 128>}, {pipeline_mode = #tpu.pipeline_mode<synchronous>, transform_indices = @transform_6, window_bounds = array<i64: 128, 4>}]} {
    %c0 = arith.constant 0 : index
    %c0_0 = arith.constant 0 : index
    %0 = vector.load %arg2[%c0, %c0_0] : memref<16x16xf32, #tpu.memory_space<vmem>>, vector<16x16xf32>
    %c0_1 = arith.constant 0 : index
    %c0_2 = arith.constant 0 : index
    %1 = vector.load %arg3[%c0_1, %c0_2] : memref<48x64xf32, #tpu.memory_space<vmem>>, vector<48x64xf32>
    %c0_3 = arith.constant 0 : index
    %c0_4 = arith.constant 0 : index
    %2 = vector.load %arg4[%c0_3, %c0_4] : memref<16x10xf32, #tpu.memory_space<vmem>>, vector<16x10xf32>
    %c0_5 = arith.constant 0 : index
    %c0_6 = arith.constant 0 : index
    %3 = vector.load %arg5[%c0_5, %c0_6] : memref<10x4xf32, #tpu.memory_space<vmem>>, vector<10x4xf32>
    %c0_7 = arith.constant 0 : index
    %c0_8 = arith.constant 0 : index
    %4 = vector.load %arg6[%c0_7, %c0_8] : memref<8x128xf32, #tpu.memory_space<vmem>>, vector<8x128xf32>
    %5 = vector.extract_strided_slice %4 {offsets = [0, 0], sizes = [1, 64], strides = [1, 1]} : vector<8x128xf32> to vector<1x64xf32>
    %6 = vector.extract_strided_slice %4 {offsets = [1, 0], sizes = [1, 16], strides = [1, 1]} : vector<8x128xf32> to vector<1x16xf32>
    %7 = vector.extract_strided_slice %4 {offsets = [2, 0], sizes = [1, 16], strides = [1, 1]} : vector<8x128xf32> to vector<1x16xf32>
    %8 = vector.extract_strided_slice %4 {offsets = [3, 0], sizes = [1, 16], strides = [1, 1]} : vector<8x128xf32> to vector<1x16xf32>
    %9 = vector.extract_strided_slice %4 {offsets = [4, 0], sizes = [1, 10], strides = [1, 1]} : vector<8x128xf32> to vector<1x10xf32>
    %10 = vector.extract_strided_slice %4 {offsets = [5, 0], sizes = [1, 4], strides = [1, 1]} : vector<8x128xf32> to vector<1x4xf32>
    %cst = arith.constant 0.000000e+00 : f32
    %11 = vector.broadcast %cst : f32 to vector<16x16xf32>
    %cst_9 = arith.constant 0.000000e+00 : f32
    %12 = vector.broadcast %cst_9 : f32 to vector<16x16xf32>
    %c0_10 = arith.constant 0 : index
    %c0_11 = arith.constant 0 : index
    %c0_12 = arith.constant 0 : index
    %13 = vector.load %arg1[%c0_10, %c0_11, %c0_12] : memref<8x16x8xf32, #tpu.memory_space<vmem>>, vector<1x16x8xf32>
    %14 = vector.shape_cast %13 : vector<1x16x8xf32> to vector<16x8xf32>
    %15 = tpu.concatenate %14, %11 in 1 : vector<16x8xf32>, vector<16x16xf32> -> vector<16x24xf32>
    %cst_13 = arith.constant dense<0.000000e+00> : vector<16x24xf32>
    %16 = tpu.matmul %0, %15, %cst_13 {dimension_numbers = #tpu.dot_dimension_numbers<[1], [0], [0], [1], [0, 0, 1, 1], [], []>} : vector<16x16xf32>, vector<16x24xf32>, vector<16x24xf32> -> vector<16x24xf32>
    %17 = tpu.concatenate %15, %16 in 1 : vector<16x24xf32>, vector<16x24xf32> -> vector<16x48xf32>
    %cst_14 = arith.constant dense<0.000000e+00> : vector<16x64xf32>
    %18 = tpu.matmul %17, %1, %cst_14 {dimension_numbers = #tpu.dot_dimension_numbers<[1], [0], [0], [1], [0, 0, 1, 1], [], []>} : vector<16x48xf32>, vector<48x64xf32>, vector<16x64xf32> -> vector<16x64xf32>
    %19 = vector.broadcast %5 : vector<1x64xf32> to vector<16x64xf32>
    %20 = arith.addf %18, %19 : vector<16x64xf32>
    %21 = vector.extract_strided_slice %20 {offsets = [0, 0], sizes = [16, 16], strides = [1, 1]} : vector<16x64xf32> to vector<16x16xf32>
    %22 = vector.extract_strided_slice %20 {offsets = [0, 16], sizes = [16, 16], strides = [1, 1]} : vector<16x64xf32> to vector<16x16xf32>
    %23 = vector.extract_strided_slice %20 {offsets = [0, 32], sizes = [16, 16], strides = [1, 1]} : vector<16x64xf32> to vector<16x16xf32>
    %24 = vector.extract_strided_slice %20 {offsets = [0, 48], sizes = [16, 16], strides = [1, 1]} : vector<16x64xf32> to vector<16x16xf32>
    %25 = vector.broadcast %6 : vector<1x16xf32> to vector<16x16xf32>
    %26 = arith.mulf %25, %12 : vector<16x16xf32>
    %27 = arith.addf %21, %26 : vector<16x16xf32>
    %28 = arith.negf %27 : vector<16x16xf32>
    %29 = math.exp %28 : vector<16x16xf32>
    %cst_15 = arith.constant 1.000000e+00 : f32
    %30 = vector.broadcast %cst_15 : f32 to vector<16x16xf32>
    %31 = arith.addf %30, %29 : vector<16x16xf32>
    %32 = arith.divf %30, %31 : vector<16x16xf32>
    %33 = vector.broadcast %7 : vector<1x16xf32> to vector<16x16xf32>
    %34 = arith.mulf %33, %12 : vector<16x16xf32>
    %35 = arith.addf %22, %34 : vector<16x16xf32>
    %36 = arith.negf %35 : vector<16x16xf32>
    %37 = math.exp %36 : vector<16x16xf32>
    %cst_16 = arith.constant 1.000000e+00 : f32
    %38 = vector.broadcast %cst_16 : f32 to vector<16x16xf32>
    %39 = arith.addf %38, %37 : vector<16x16xf32>
    %40 = arith.divf %38, %39 : vector<16x16xf32>
    %41 = math.tanh %23 : vector<16x16xf32>
    %42 = arith.mulf %40, %12 : vector<16x16xf32>
    %43 = arith.mulf %32, %41 : vector<16x16xf32>
    %44 = arith.addf %42, %43 : vector<16x16xf32>
    %45 = vector.broadcast %8 : vector<1x16xf32> to vector<16x16xf32>
    %46 = arith.mulf %45, %44 : vector<16x16xf32>
    %47 = arith.addf %24, %46 : vector<16x16xf32>
    %48 = arith.negf %47 : vector<16x16xf32>
    %49 = math.exp %48 : vector<16x16xf32>
    %cst_17 = arith.constant 1.000000e+00 : f32
    %50 = vector.broadcast %cst_17 : f32 to vector<16x16xf32>
    %51 = arith.addf %50, %49 : vector<16x16xf32>
    %52 = arith.divf %50, %51 : vector<16x16xf32>
    %53 = math.tanh %44 : vector<16x16xf32>
    %54 = arith.mulf %52, %53 : vector<16x16xf32>
    %c1 = arith.constant 1 : index
    %c0_18 = arith.constant 0 : index
    %c0_19 = arith.constant 0 : index
    %55 = vector.load %arg1[%c1, %c0_18, %c0_19] : memref<8x16x8xf32, #tpu.memory_space<vmem>>, vector<1x16x8xf32>
    %56 = vector.shape_cast %55 : vector<1x16x8xf32> to vector<16x8xf32>
    %57 = tpu.concatenate %56, %54 in 1 : vector<16x8xf32>, vector<16x16xf32> -> vector<16x24xf32>
    %cst_20 = arith.constant dense<0.000000e+00> : vector<16x24xf32>
    %58 = tpu.matmul %0, %57, %cst_20 {dimension_numbers = #tpu.dot_dimension_numbers<[1], [0], [0], [1], [0, 0, 1, 1], [], []>} : vector<16x16xf32>, vector<16x24xf32>, vector<16x24xf32> -> vector<16x24xf32>
    %59 = tpu.concatenate %57, %58 in 1 : vector<16x24xf32>, vector<16x24xf32> -> vector<16x48xf32>
    %cst_21 = arith.constant dense<0.000000e+00> : vector<16x64xf32>
    %60 = tpu.matmul %59, %1, %cst_21 {dimension_numbers = #tpu.dot_dimension_numbers<[1], [0], [0], [1], [0, 0, 1, 1], [], []>} : vector<16x48xf32>, vector<48x64xf32>, vector<16x64xf32> -> vector<16x64xf32>
    %61 = vector.broadcast %5 : vector<1x64xf32> to vector<16x64xf32>
    %62 = arith.addf %60, %61 : vector<16x64xf32>
    %63 = vector.extract_strided_slice %62 {offsets = [0, 0], sizes = [16, 16], strides = [1, 1]} : vector<16x64xf32> to vector<16x16xf32>
    %64 = vector.extract_strided_slice %62 {offsets = [0, 16], sizes = [16, 16], strides = [1, 1]} : vector<16x64xf32> to vector<16x16xf32>
    %65 = vector.extract_strided_slice %62 {offsets = [0, 32], sizes = [16, 16], strides = [1, 1]} : vector<16x64xf32> to vector<16x16xf32>
    %66 = vector.extract_strided_slice %62 {offsets = [0, 48], sizes = [16, 16], strides = [1, 1]} : vector<16x64xf32> to vector<16x16xf32>
    %67 = vector.broadcast %6 : vector<1x16xf32> to vector<16x16xf32>
    %68 = arith.mulf %67, %44 : vector<16x16xf32>
    %69 = arith.addf %63, %68 : vector<16x16xf32>
    %70 = arith.negf %69 : vector<16x16xf32>
    %71 = math.exp %70 : vector<16x16xf32>
    %cst_22 = arith.constant 1.000000e+00 : f32
    %72 = vector.broadcast %cst_22 : f32 to vector<16x16xf32>
    %73 = arith.addf %72, %71 : vector<16x16xf32>
    %74 = arith.divf %72, %73 : vector<16x16xf32>
    %75 = vector.broadcast %7 : vector<1x16xf32> to vector<16x16xf32>
    %76 = arith.mulf %75, %44 : vector<16x16xf32>
    %77 = arith.addf %64, %76 : vector<16x16xf32>
    %78 = arith.negf %77 : vector<16x16xf32>
    %79 = math.exp %78 : vector<16x16xf32>
    %cst_23 = arith.constant 1.000000e+00 : f32
    %80 = vector.broadcast %cst_23 : f32 to vector<16x16xf32>
    %81 = arith.addf %80, %79 : vector<16x16xf32>
    %82 = arith.divf %80, %81 : vector<16x16xf32>
    %83 = math.tanh %65 : vector<16x16xf32>
    %84 = arith.mulf %82, %44 : vector<16x16xf32>
    %85 = arith.mulf %74, %83 : vector<16x16xf32>
    %86 = arith.addf %84, %85 : vector<16x16xf32>
    %87 = vector.broadcast %8 : vector<1x16xf32> to vector<16x16xf32>
    %88 = arith.mulf %87, %86 : vector<16x16xf32>
    %89 = arith.addf %66, %88 : vector<16x16xf32>
    %90 = arith.negf %89 : vector<16x16xf32>
    %91 = math.exp %90 : vector<16x16xf32>
    %cst_24 = arith.constant 1.000000e+00 : f32
    %92 = vector.broadcast %cst_24 : f32 to vector<16x16xf32>
    %93 = arith.addf %92, %91 : vector<16x16xf32>
    %94 = arith.divf %92, %93 : vector<16x16xf32>
    %95 = math.tanh %86 : vector<16x16xf32>
    %96 = arith.mulf %94, %95 : vector<16x16xf32>
    %c2 = arith.constant 2 : index
    %c0_25 = arith.constant 0 : index
    %c0_26 = arith.constant 0 : index
    %97 = vector.load %arg1[%c2, %c0_25, %c0_26] : memref<8x16x8xf32, #tpu.memory_space<vmem>>, vector<1x16x8xf32>
    %98 = vector.shape_cast %97 : vector<1x16x8xf32> to vector<16x8xf32>
    %99 = tpu.concatenate %98, %96 in 1 : vector<16x8xf32>, vector<16x16xf32> -> vector<16x24xf32>
    %cst_27 = arith.constant dense<0.000000e+00> : vector<16x24xf32>
    %100 = tpu.matmul %0, %99, %cst_27 {dimension_numbers = #tpu.dot_dimension_numbers<[1], [0], [0], [1], [0, 0, 1, 1], [], []>} : vector<16x16xf32>, vector<16x24xf32>, vector<16x24xf32> -> vector<16x24xf32>
    %101 = tpu.concatenate %99, %100 in 1 : vector<16x24xf32>, vector<16x24xf32> -> vector<16x48xf32>
    %cst_28 = arith.constant dense<0.000000e+00> : vector<16x64xf32>
    %102 = tpu.matmul %101, %1, %cst_28 {dimension_numbers = #tpu.dot_dimension_numbers<[1], [0], [0], [1], [0, 0, 1, 1], [], []>} : vector<16x48xf32>, vector<48x64xf32>, vector<16x64xf32> -> vector<16x64xf32>
    %103 = vector.broadcast %5 : vector<1x64xf32> to vector<16x64xf32>
    %104 = arith.addf %102, %103 : vector<16x64xf32>
    %105 = vector.extract_strided_slice %104 {offsets = [0, 0], sizes = [16, 16], strides = [1, 1]} : vector<16x64xf32> to vector<16x16xf32>
    %106 = vector.extract_strided_slice %104 {offsets = [0, 16], sizes = [16, 16], strides = [1, 1]} : vector<16x64xf32> to vector<16x16xf32>
    %107 = vector.extract_strided_slice %104 {offsets = [0, 32], sizes = [16, 16], strides = [1, 1]} : vector<16x64xf32> to vector<16x16xf32>
    %108 = vector.extract_strided_slice %104 {offsets = [0, 48], sizes = [16, 16], strides = [1, 1]} : vector<16x64xf32> to vector<16x16xf32>
    %109 = vector.broadcast %6 : vector<1x16xf32> to vector<16x16xf32>
    %110 = arith.mulf %109, %86 : vector<16x16xf32>
    %111 = arith.addf %105, %110 : vector<16x16xf32>
    %112 = arith.negf %111 : vector<16x16xf32>
    %113 = math.exp %112 : vector<16x16xf32>
    %cst_29 = arith.constant 1.000000e+00 : f32
    %114 = vector.broadcast %cst_29 : f32 to vector<16x16xf32>
    %115 = arith.addf %114, %113 : vector<16x16xf32>
    %116 = arith.divf %114, %115 : vector<16x16xf32>
    %117 = vector.broadcast %7 : vector<1x16xf32> to vector<16x16xf32>
    %118 = arith.mulf %117, %86 : vector<16x16xf32>
    %119 = arith.addf %106, %118 : vector<16x16xf32>
    %120 = arith.negf %119 : vector<16x16xf32>
    %121 = math.exp %120 : vector<16x16xf32>
    %cst_30 = arith.constant 1.000000e+00 : f32
    %122 = vector.broadcast %cst_30 : f32 to vector<16x16xf32>
    %123 = arith.addf %122, %121 : vector<16x16xf32>
    %124 = arith.divf %122, %123 : vector<16x16xf32>
    %125 = math.tanh %107 : vector<16x16xf32>
    %126 = arith.mulf %124, %86 : vector<16x16xf32>
    %127 = arith.mulf %116, %125 : vector<16x16xf32>
    %128 = arith.addf %126, %127 : vector<16x16xf32>
    %129 = vector.broadcast %8 : vector<1x16xf32> to vector<16x16xf32>
    %130 = arith.mulf %129, %128 : vector<16x16xf32>
    %131 = arith.addf %108, %130 : vector<16x16xf32>
    %132 = arith.negf %131 : vector<16x16xf32>
    %133 = math.exp %132 : vector<16x16xf32>
    %cst_31 = arith.constant 1.000000e+00 : f32
    %134 = vector.broadcast %cst_31 : f32 to vector<16x16xf32>
    %135 = arith.addf %134, %133 : vector<16x16xf32>
    %136 = arith.divf %134, %135 : vector<16x16xf32>
    %137 = math.tanh %128 : vector<16x16xf32>
    %138 = arith.mulf %136, %137 : vector<16x16xf32>
    %c3 = arith.constant 3 : index
    %c0_32 = arith.constant 0 : index
    %c0_33 = arith.constant 0 : index
    %139 = vector.load %arg1[%c3, %c0_32, %c0_33] : memref<8x16x8xf32, #tpu.memory_space<vmem>>, vector<1x16x8xf32>
    %140 = vector.shape_cast %139 : vector<1x16x8xf32> to vector<16x8xf32>
    %141 = tpu.concatenate %140, %138 in 1 : vector<16x8xf32>, vector<16x16xf32> -> vector<16x24xf32>
    %cst_34 = arith.constant dense<0.000000e+00> : vector<16x24xf32>
    %142 = tpu.matmul %0, %141, %cst_34 {dimension_numbers = #tpu.dot_dimension_numbers<[1], [0], [0], [1], [0, 0, 1, 1], [], []>} : vector<16x16xf32>, vector<16x24xf32>, vector<16x24xf32> -> vector<16x24xf32>
    %143 = tpu.concatenate %141, %142 in 1 : vector<16x24xf32>, vector<16x24xf32> -> vector<16x48xf32>
    %cst_35 = arith.constant dense<0.000000e+00> : vector<16x64xf32>
    %144 = tpu.matmul %143, %1, %cst_35 {dimension_numbers = #tpu.dot_dimension_numbers<[1], [0], [0], [1], [0, 0, 1, 1], [], []>} : vector<16x48xf32>, vector<48x64xf32>, vector<16x64xf32> -> vector<16x64xf32>
    %145 = vector.broadcast %5 : vector<1x64xf32> to vector<16x64xf32>
    %146 = arith.addf %144, %145 : vector<16x64xf32>
    %147 = vector.extract_strided_slice %146 {offsets = [0, 0], sizes = [16, 16], strides = [1, 1]} : vector<16x64xf32> to vector<16x16xf32>
    %148 = vector.extract_strided_slice %146 {offsets = [0, 16], sizes = [16, 16], strides = [1, 1]} : vector<16x64xf32> to vector<16x16xf32>
    %149 = vector.extract_strided_slice %146 {offsets = [0, 32], sizes = [16, 16], strides = [1, 1]} : vector<16x64xf32> to vector<16x16xf32>
    %150 = vector.extract_strided_slice %146 {offsets = [0, 48], sizes = [16, 16], strides = [1, 1]} : vector<16x64xf32> to vector<16x16xf32>
    %151 = vector.broadcast %6 : vector<1x16xf32> to vector<16x16xf32>
    %152 = arith.mulf %151, %128 : vector<16x16xf32>
    %153 = arith.addf %147, %152 : vector<16x16xf32>
    %154 = arith.negf %153 : vector<16x16xf32>
    %155 = math.exp %154 : vector<16x16xf32>
    %cst_36 = arith.constant 1.000000e+00 : f32
    %156 = vector.broadcast %cst_36 : f32 to vector<16x16xf32>
    %157 = arith.addf %156, %155 : vector<16x16xf32>
    %158 = arith.divf %156, %157 : vector<16x16xf32>
    %159 = vector.broadcast %7 : vector<1x16xf32> to vector<16x16xf32>
    %160 = arith.mulf %159, %128 : vector<16x16xf32>
    %161 = arith.addf %148, %160 : vector<16x16xf32>
    %162 = arith.negf %161 : vector<16x16xf32>
    %163 = math.exp %162 : vector<16x16xf32>
    %cst_37 = arith.constant 1.000000e+00 : f32
    %164 = vector.broadcast %cst_37 : f32 to vector<16x16xf32>
    %165 = arith.addf %164, %163 : vector<16x16xf32>
    %166 = arith.divf %164, %165 : vector<16x16xf32>
    %167 = math.tanh %149 : vector<16x16xf32>
    %168 = arith.mulf %166, %128 : vector<16x16xf32>
    %169 = arith.mulf %158, %167 : vector<16x16xf32>
    %170 = arith.addf %168, %169 : vector<16x16xf32>
    %171 = vector.broadcast %8 : vector<1x16xf32> to vector<16x16xf32>
    %172 = arith.mulf %171, %170 : vector<16x16xf32>
    %173 = arith.addf %150, %172 : vector<16x16xf32>
    %174 = arith.negf %173 : vector<16x16xf32>
    %175 = math.exp %174 : vector<16x16xf32>
    %cst_38 = arith.constant 1.000000e+00 : f32
    %176 = vector.broadcast %cst_38 : f32 to vector<16x16xf32>
    %177 = arith.addf %176, %175 : vector<16x16xf32>
    %178 = arith.divf %176, %177 : vector<16x16xf32>
    %179 = math.tanh %170 : vector<16x16xf32>
    %180 = arith.mulf %178, %179 : vector<16x16xf32>
    %c4 = arith.constant 4 : index
    %c0_39 = arith.constant 0 : index
    %c0_40 = arith.constant 0 : index
    %181 = vector.load %arg1[%c4, %c0_39, %c0_40] : memref<8x16x8xf32, #tpu.memory_space<vmem>>, vector<1x16x8xf32>
    %182 = vector.shape_cast %181 : vector<1x16x8xf32> to vector<16x8xf32>
    %183 = tpu.concatenate %182, %180 in 1 : vector<16x8xf32>, vector<16x16xf32> -> vector<16x24xf32>
    %cst_41 = arith.constant dense<0.000000e+00> : vector<16x24xf32>
    %184 = tpu.matmul %0, %183, %cst_41 {dimension_numbers = #tpu.dot_dimension_numbers<[1], [0], [0], [1], [0, 0, 1, 1], [], []>} : vector<16x16xf32>, vector<16x24xf32>, vector<16x24xf32> -> vector<16x24xf32>
    %185 = tpu.concatenate %183, %184 in 1 : vector<16x24xf32>, vector<16x24xf32> -> vector<16x48xf32>
    %cst_42 = arith.constant dense<0.000000e+00> : vector<16x64xf32>
    %186 = tpu.matmul %185, %1, %cst_42 {dimension_numbers = #tpu.dot_dimension_numbers<[1], [0], [0], [1], [0, 0, 1, 1], [], []>} : vector<16x48xf32>, vector<48x64xf32>, vector<16x64xf32> -> vector<16x64xf32>
    %187 = vector.broadcast %5 : vector<1x64xf32> to vector<16x64xf32>
    %188 = arith.addf %186, %187 : vector<16x64xf32>
    %189 = vector.extract_strided_slice %188 {offsets = [0, 0], sizes = [16, 16], strides = [1, 1]} : vector<16x64xf32> to vector<16x16xf32>
    %190 = vector.extract_strided_slice %188 {offsets = [0, 16], sizes = [16, 16], strides = [1, 1]} : vector<16x64xf32> to vector<16x16xf32>
    %191 = vector.extract_strided_slice %188 {offsets = [0, 32], sizes = [16, 16], strides = [1, 1]} : vector<16x64xf32> to vector<16x16xf32>
    %192 = vector.extract_strided_slice %188 {offsets = [0, 48], sizes = [16, 16], strides = [1, 1]} : vector<16x64xf32> to vector<16x16xf32>
    %193 = vector.broadcast %6 : vector<1x16xf32> to vector<16x16xf32>
    %194 = arith.mulf %193, %170 : vector<16x16xf32>
    %195 = arith.addf %189, %194 : vector<16x16xf32>
    %196 = arith.negf %195 : vector<16x16xf32>
    %197 = math.exp %196 : vector<16x16xf32>
    %cst_43 = arith.constant 1.000000e+00 : f32
    %198 = vector.broadcast %cst_43 : f32 to vector<16x16xf32>
    %199 = arith.addf %198, %197 : vector<16x16xf32>
    %200 = arith.divf %198, %199 : vector<16x16xf32>
    %201 = vector.broadcast %7 : vector<1x16xf32> to vector<16x16xf32>
    %202 = arith.mulf %201, %170 : vector<16x16xf32>
    %203 = arith.addf %190, %202 : vector<16x16xf32>
    %204 = arith.negf %203 : vector<16x16xf32>
    %205 = math.exp %204 : vector<16x16xf32>
    %cst_44 = arith.constant 1.000000e+00 : f32
    %206 = vector.broadcast %cst_44 : f32 to vector<16x16xf32>
    %207 = arith.addf %206, %205 : vector<16x16xf32>
    %208 = arith.divf %206, %207 : vector<16x16xf32>
    %209 = math.tanh %191 : vector<16x16xf32>
    %210 = arith.mulf %208, %170 : vector<16x16xf32>
    %211 = arith.mulf %200, %209 : vector<16x16xf32>
    %212 = arith.addf %210, %211 : vector<16x16xf32>
    %213 = vector.broadcast %8 : vector<1x16xf32> to vector<16x16xf32>
    %214 = arith.mulf %213, %212 : vector<16x16xf32>
    %215 = arith.addf %192, %214 : vector<16x16xf32>
    %216 = arith.negf %215 : vector<16x16xf32>
    %217 = math.exp %216 : vector<16x16xf32>
    %cst_45 = arith.constant 1.000000e+00 : f32
    %218 = vector.broadcast %cst_45 : f32 to vector<16x16xf32>
    %219 = arith.addf %218, %217 : vector<16x16xf32>
    %220 = arith.divf %218, %219 : vector<16x16xf32>
    %221 = math.tanh %212 : vector<16x16xf32>
    %222 = arith.mulf %220, %221 : vector<16x16xf32>
    %c5 = arith.constant 5 : index
    %c0_46 = arith.constant 0 : index
    %c0_47 = arith.constant 0 : index
    %223 = vector.load %arg1[%c5, %c0_46, %c0_47] : memref<8x16x8xf32, #tpu.memory_space<vmem>>, vector<1x16x8xf32>
    %224 = vector.shape_cast %223 : vector<1x16x8xf32> to vector<16x8xf32>
    %225 = tpu.concatenate %224, %222 in 1 : vector<16x8xf32>, vector<16x16xf32> -> vector<16x24xf32>
    %cst_48 = arith.constant dense<0.000000e+00> : vector<16x24xf32>
    %226 = tpu.matmul %0, %225, %cst_48 {dimension_numbers = #tpu.dot_dimension_numbers<[1], [0], [0], [1], [0, 0, 1, 1], [], []>} : vector<16x16xf32>, vector<16x24xf32>, vector<16x24xf32> -> vector<16x24xf32>
    %227 = tpu.concatenate %225, %226 in 1 : vector<16x24xf32>, vector<16x24xf32> -> vector<16x48xf32>
    %cst_49 = arith.constant dense<0.000000e+00> : vector<16x64xf32>
    %228 = tpu.matmul %227, %1, %cst_49 {dimension_numbers = #tpu.dot_dimension_numbers<[1], [0], [0], [1], [0, 0, 1, 1], [], []>} : vector<16x48xf32>, vector<48x64xf32>, vector<16x64xf32> -> vector<16x64xf32>
    %229 = vector.broadcast %5 : vector<1x64xf32> to vector<16x64xf32>
    %230 = arith.addf %228, %229 : vector<16x64xf32>
    %231 = vector.extract_strided_slice %230 {offsets = [0, 0], sizes = [16, 16], strides = [1, 1]} : vector<16x64xf32> to vector<16x16xf32>
    %232 = vector.extract_strided_slice %230 {offsets = [0, 16], sizes = [16, 16], strides = [1, 1]} : vector<16x64xf32> to vector<16x16xf32>
    %233 = vector.extract_strided_slice %230 {offsets = [0, 32], sizes = [16, 16], strides = [1, 1]} : vector<16x64xf32> to vector<16x16xf32>
    %234 = vector.extract_strided_slice %230 {offsets = [0, 48], sizes = [16, 16], strides = [1, 1]} : vector<16x64xf32> to vector<16x16xf32>
    %235 = vector.broadcast %6 : vector<1x16xf32> to vector<16x16xf32>
    %236 = arith.mulf %235, %212 : vector<16x16xf32>
    %237 = arith.addf %231, %236 : vector<16x16xf32>
    %238 = arith.negf %237 : vector<16x16xf32>
    %239 = math.exp %238 : vector<16x16xf32>
    %cst_50 = arith.constant 1.000000e+00 : f32
    %240 = vector.broadcast %cst_50 : f32 to vector<16x16xf32>
    %241 = arith.addf %240, %239 : vector<16x16xf32>
    %242 = arith.divf %240, %241 : vector<16x16xf32>
    %243 = vector.broadcast %7 : vector<1x16xf32> to vector<16x16xf32>
    %244 = arith.mulf %243, %212 : vector<16x16xf32>
    %245 = arith.addf %232, %244 : vector<16x16xf32>
    %246 = arith.negf %245 : vector<16x16xf32>
    %247 = math.exp %246 : vector<16x16xf32>
    %cst_51 = arith.constant 1.000000e+00 : f32
    %248 = vector.broadcast %cst_51 : f32 to vector<16x16xf32>
    %249 = arith.addf %248, %247 : vector<16x16xf32>
    %250 = arith.divf %248, %249 : vector<16x16xf32>
    %251 = math.tanh %233 : vector<16x16xf32>
    %252 = arith.mulf %250, %212 : vector<16x16xf32>
    %253 = arith.mulf %242, %251 : vector<16x16xf32>
    %254 = arith.addf %252, %253 : vector<16x16xf32>
    %255 = vector.broadcast %8 : vector<1x16xf32> to vector<16x16xf32>
    %256 = arith.mulf %255, %254 : vector<16x16xf32>
    %257 = arith.addf %234, %256 : vector<16x16xf32>
    %258 = arith.negf %257 : vector<16x16xf32>
    %259 = math.exp %258 : vector<16x16xf32>
    %cst_52 = arith.constant 1.000000e+00 : f32
    %260 = vector.broadcast %cst_52 : f32 to vector<16x16xf32>
    %261 = arith.addf %260, %259 : vector<16x16xf32>
    %262 = arith.divf %260, %261 : vector<16x16xf32>
    %263 = math.tanh %254 : vector<16x16xf32>
    %264 = arith.mulf %262, %263 : vector<16x16xf32>
    %c6 = arith.constant 6 : index
    %c0_53 = arith.constant 0 : index
    %c0_54 = arith.constant 0 : index
    %265 = vector.load %arg1[%c6, %c0_53, %c0_54] : memref<8x16x8xf32, #tpu.memory_space<vmem>>, vector<1x16x8xf32>
    %266 = vector.shape_cast %265 : vector<1x16x8xf32> to vector<16x8xf32>
    %267 = tpu.concatenate %266, %264 in 1 : vector<16x8xf32>, vector<16x16xf32> -> vector<16x24xf32>
    %cst_55 = arith.constant dense<0.000000e+00> : vector<16x24xf32>
    %268 = tpu.matmul %0, %267, %cst_55 {dimension_numbers = #tpu.dot_dimension_numbers<[1], [0], [0], [1], [0, 0, 1, 1], [], []>} : vector<16x16xf32>, vector<16x24xf32>, vector<16x24xf32> -> vector<16x24xf32>
    %269 = tpu.concatenate %267, %268 in 1 : vector<16x24xf32>, vector<16x24xf32> -> vector<16x48xf32>
    %cst_56 = arith.constant dense<0.000000e+00> : vector<16x64xf32>
    %270 = tpu.matmul %269, %1, %cst_56 {dimension_numbers = #tpu.dot_dimension_numbers<[1], [0], [0], [1], [0, 0, 1, 1], [], []>} : vector<16x48xf32>, vector<48x64xf32>, vector<16x64xf32> -> vector<16x64xf32>
    %271 = vector.broadcast %5 : vector<1x64xf32> to vector<16x64xf32>
    %272 = arith.addf %270, %271 : vector<16x64xf32>
    %273 = vector.extract_strided_slice %272 {offsets = [0, 0], sizes = [16, 16], strides = [1, 1]} : vector<16x64xf32> to vector<16x16xf32>
    %274 = vector.extract_strided_slice %272 {offsets = [0, 16], sizes = [16, 16], strides = [1, 1]} : vector<16x64xf32> to vector<16x16xf32>
    %275 = vector.extract_strided_slice %272 {offsets = [0, 32], sizes = [16, 16], strides = [1, 1]} : vector<16x64xf32> to vector<16x16xf32>
    %276 = vector.extract_strided_slice %272 {offsets = [0, 48], sizes = [16, 16], strides = [1, 1]} : vector<16x64xf32> to vector<16x16xf32>
    %277 = vector.broadcast %6 : vector<1x16xf32> to vector<16x16xf32>
    %278 = arith.mulf %277, %254 : vector<16x16xf32>
    %279 = arith.addf %273, %278 : vector<16x16xf32>
    %280 = arith.negf %279 : vector<16x16xf32>
    %281 = math.exp %280 : vector<16x16xf32>
    %cst_57 = arith.constant 1.000000e+00 : f32
    %282 = vector.broadcast %cst_57 : f32 to vector<16x16xf32>
    %283 = arith.addf %282, %281 : vector<16x16xf32>
    %284 = arith.divf %282, %283 : vector<16x16xf32>
    %285 = vector.broadcast %7 : vector<1x16xf32> to vector<16x16xf32>
    %286 = arith.mulf %285, %254 : vector<16x16xf32>
    %287 = arith.addf %274, %286 : vector<16x16xf32>
    %288 = arith.negf %287 : vector<16x16xf32>
    %289 = math.exp %288 : vector<16x16xf32>
    %cst_58 = arith.constant 1.000000e+00 : f32
    %290 = vector.broadcast %cst_58 : f32 to vector<16x16xf32>
    %291 = arith.addf %290, %289 : vector<16x16xf32>
    %292 = arith.divf %290, %291 : vector<16x16xf32>
    %293 = math.tanh %275 : vector<16x16xf32>
    %294 = arith.mulf %292, %254 : vector<16x16xf32>
    %295 = arith.mulf %284, %293 : vector<16x16xf32>
    %296 = arith.addf %294, %295 : vector<16x16xf32>
    %297 = vector.broadcast %8 : vector<1x16xf32> to vector<16x16xf32>
    %298 = arith.mulf %297, %296 : vector<16x16xf32>
    %299 = arith.addf %276, %298 : vector<16x16xf32>
    %300 = arith.negf %299 : vector<16x16xf32>
    %301 = math.exp %300 : vector<16x16xf32>
    %cst_59 = arith.constant 1.000000e+00 : f32
    %302 = vector.broadcast %cst_59 : f32 to vector<16x16xf32>
    %303 = arith.addf %302, %301 : vector<16x16xf32>
    %304 = arith.divf %302, %303 : vector<16x16xf32>
    %305 = math.tanh %296 : vector<16x16xf32>
    %306 = arith.mulf %304, %305 : vector<16x16xf32>
    %c7 = arith.constant 7 : index
    %c0_60 = arith.constant 0 : index
    %c0_61 = arith.constant 0 : index
    %307 = vector.load %arg1[%c7, %c0_60, %c0_61] : memref<8x16x8xf32, #tpu.memory_space<vmem>>, vector<1x16x8xf32>
    %308 = vector.shape_cast %307 : vector<1x16x8xf32> to vector<16x8xf32>
    %309 = tpu.concatenate %308, %306 in 1 : vector<16x8xf32>, vector<16x16xf32> -> vector<16x24xf32>
    %cst_62 = arith.constant dense<0.000000e+00> : vector<16x24xf32>
    %310 = tpu.matmul %0, %309, %cst_62 {dimension_numbers = #tpu.dot_dimension_numbers<[1], [0], [0], [1], [0, 0, 1, 1], [], []>} : vector<16x16xf32>, vector<16x24xf32>, vector<16x24xf32> -> vector<16x24xf32>
    %311 = tpu.concatenate %309, %310 in 1 : vector<16x24xf32>, vector<16x24xf32> -> vector<16x48xf32>
    %cst_63 = arith.constant dense<0.000000e+00> : vector<16x64xf32>
    %312 = tpu.matmul %311, %1, %cst_63 {dimension_numbers = #tpu.dot_dimension_numbers<[1], [0], [0], [1], [0, 0, 1, 1], [], []>} : vector<16x48xf32>, vector<48x64xf32>, vector<16x64xf32> -> vector<16x64xf32>
    %313 = vector.broadcast %5 : vector<1x64xf32> to vector<16x64xf32>
    %314 = arith.addf %312, %313 : vector<16x64xf32>
    %315 = vector.extract_strided_slice %314 {offsets = [0, 0], sizes = [16, 16], strides = [1, 1]} : vector<16x64xf32> to vector<16x16xf32>
    %316 = vector.extract_strided_slice %314 {offsets = [0, 16], sizes = [16, 16], strides = [1, 1]} : vector<16x64xf32> to vector<16x16xf32>
    %317 = vector.extract_strided_slice %314 {offsets = [0, 32], sizes = [16, 16], strides = [1, 1]} : vector<16x64xf32> to vector<16x16xf32>
    %318 = vector.extract_strided_slice %314 {offsets = [0, 48], sizes = [16, 16], strides = [1, 1]} : vector<16x64xf32> to vector<16x16xf32>
    %319 = vector.broadcast %6 : vector<1x16xf32> to vector<16x16xf32>
    %320 = arith.mulf %319, %296 : vector<16x16xf32>
    %321 = arith.addf %315, %320 : vector<16x16xf32>
    %322 = arith.negf %321 : vector<16x16xf32>
    %323 = math.exp %322 : vector<16x16xf32>
    %cst_64 = arith.constant 1.000000e+00 : f32
    %324 = vector.broadcast %cst_64 : f32 to vector<16x16xf32>
    %325 = arith.addf %324, %323 : vector<16x16xf32>
    %326 = arith.divf %324, %325 : vector<16x16xf32>
    %327 = vector.broadcast %7 : vector<1x16xf32> to vector<16x16xf32>
    %328 = arith.mulf %327, %296 : vector<16x16xf32>
    %329 = arith.addf %316, %328 : vector<16x16xf32>
    %330 = arith.negf %329 : vector<16x16xf32>
    %331 = math.exp %330 : vector<16x16xf32>
    %cst_65 = arith.constant 1.000000e+00 : f32
    %332 = vector.broadcast %cst_65 : f32 to vector<16x16xf32>
    %333 = arith.addf %332, %331 : vector<16x16xf32>
    %334 = arith.divf %332, %333 : vector<16x16xf32>
    %335 = math.tanh %317 : vector<16x16xf32>
    %336 = arith.mulf %334, %296 : vector<16x16xf32>
    %337 = arith.mulf %326, %335 : vector<16x16xf32>
    %338 = arith.addf %336, %337 : vector<16x16xf32>
    %339 = vector.broadcast %8 : vector<1x16xf32> to vector<16x16xf32>
    %340 = arith.mulf %339, %338 : vector<16x16xf32>
    %341 = arith.addf %318, %340 : vector<16x16xf32>
    %342 = arith.negf %341 : vector<16x16xf32>
    %343 = math.exp %342 : vector<16x16xf32>
    %cst_66 = arith.constant 1.000000e+00 : f32
    %344 = vector.broadcast %cst_66 : f32 to vector<16x16xf32>
    %345 = arith.addf %344, %343 : vector<16x16xf32>
    %346 = arith.divf %344, %345 : vector<16x16xf32>
    %347 = math.tanh %338 : vector<16x16xf32>
    %348 = arith.mulf %346, %347 : vector<16x16xf32>
    %349 = tpu.concatenate %54, %96, %138, %180, %222, %264, %306, %348 in 0 : vector<16x16xf32>, vector<16x16xf32>, vector<16x16xf32>, vector<16x16xf32>, vector<16x16xf32>, vector<16x16xf32>, vector<16x16xf32>, vector<16x16xf32> -> vector<128x16xf32>
    %350 = math.tanh %349 : vector<128x16xf32>
    %cst_67 = arith.constant dense<0.000000e+00> : vector<128x10xf32>
    %351 = tpu.matmul %350, %2, %cst_67 {dimension_numbers = #tpu.dot_dimension_numbers<[1], [0], [0], [1], [0, 0, 1, 1], [], []>} : vector<128x16xf32>, vector<16x10xf32>, vector<128x10xf32> -> vector<128x10xf32>
    %352 = vector.broadcast %9 : vector<1x10xf32> to vector<128x10xf32>
    %353 = arith.addf %351, %352 : vector<128x10xf32>
    %cst_68 = arith.constant 0.000000e+00 : f32
    %354 = vector.broadcast %cst_68 : f32 to vector<128x10xf32>
    %355 = arith.maximumf %353, %354 : vector<128x10xf32>
    %cst_69 = arith.constant dense<0.000000e+00> : vector<128x4xf32>
    %356 = tpu.matmul %355, %3, %cst_69 {dimension_numbers = #tpu.dot_dimension_numbers<[1], [0], [0], [1], [0, 0, 1, 1], [], []>} : vector<128x10xf32>, vector<10x4xf32>, vector<128x4xf32> -> vector<128x4xf32>
    %357 = vector.broadcast %10 : vector<1x4xf32> to vector<128x4xf32>
    %358 = arith.addf %356, %357 : vector<128x4xf32>
    %359 = arith.negf %358 : vector<128x4xf32>
    %360 = math.exp %359 : vector<128x4xf32>
    %cst_70 = arith.constant 1.000000e+00 : f32
    %361 = vector.broadcast %cst_70 : f32 to vector<128x4xf32>
    %362 = arith.addf %361, %360 : vector<128x4xf32>
    %363 = arith.divf %361, %362 : vector<128x4xf32>
    %c0_71 = arith.constant 0 : index
    %c0_72 = arith.constant 0 : index
    %364 = vector.load %arg7[%c0_71, %c0_72] : memref<128x4xf32, #tpu.memory_space<vmem>>, vector<128x4xf32>
    tpu.vector_store %arg7[%c0_71, %c0_72], %363 {strides = array<i32>} : memref<128x4xf32, #tpu.memory_space<vmem>>, vector<128x4xf32>,
    return
  }
  func.func @transform_0(%arg0: i32) -> (i32, i32, i32) {
    %c0_i32 = arith.constant 0 : i32
    %c0_i32_0 = arith.constant 0 : i32
    %c0_i32_1 = arith.constant 0 : i32
    %c0_i32_2 = arith.constant 0 : i32
    return %c0_i32, %c0_i32_0, %c0_i32_1 : i32, i32, i32
  }
  func.func @transform_1(%arg0: i32) -> (i32, i32) {
    %c0_i32 = arith.constant 0 : i32
    %c0_i32_0 = arith.constant 0 : i32
    %c0_i32_1 = arith.constant 0 : i32
    return %c0_i32, %c0_i32_0 : i32, i32
  }
  func.func @transform_2(%arg0: i32) -> (i32, i32) {
    %c0_i32 = arith.constant 0 : i32
    %c0_i32_0 = arith.constant 0 : i32
    %c0_i32_1 = arith.constant 0 : i32
    return %c0_i32, %c0_i32_0 : i32, i32
  }
  func.func @transform_3(%arg0: i32) -> (i32, i32) {
    %c0_i32 = arith.constant 0 : i32
    %c0_i32_0 = arith.constant 0 : i32
    %c0_i32_1 = arith.constant 0 : i32
    return %c0_i32, %c0_i32_0 : i32, i32
  }
  func.func @transform_4(%arg0: i32) -> (i32, i32) {
    %c0_i32 = arith.constant 0 : i32
    %c0_i32_0 = arith.constant 0 : i32
    %c0_i32_1 = arith.constant 0 : i32
    return %c0_i32, %c0_i32_0 : i32, i32
  }
  func.func @transform_5(%arg0: i32) -> (i32, i32) {
    %c0_i32 = arith.constant 0 : i32
    %c0_i32_0 = arith.constant 0 : i32
    %c0_i32_1 = arith.constant 0 : i32
    return %c0_i32, %c0_i32_0 : i32, i32
  }
  func.func @transform_6(%arg0: i32) -> (i32, i32) {
    %c0_i32 = arith.constant 0 : i32
    %c0_i32_0 = arith.constant 0 : i32
    %c0_i32_1 = arith.constant 0 : i32
    return %c0_i32, %c0_i32_0 : i32, i32
  }
}

</mosaic_0001>

<bundles_post_ra>
// kernel: tpu_custom_call.1
= control target key start
LH: loop header
LB: loop body
LE: loop exit
PB: predicated region body
PF: predicated region fallthrough
CT: control target
= control target key end

     0   :  { %vm38_vm0 = vcmask 64512   ;;  %vm41_vm1 = vcmask 130048   ;;  %v134_v10 = vlaneseq  ;;  %s3801_s19 = smov 24   ;;  %s3802_s20 = smov 16   ;;  %vm131_vm2 = vcmask 195584   ;;  %s4805_s0 = inlined_call_operand.vmem [shape: f32[8,16,8], index: 0, kind: input, shape index: {}]   ;;  %s4806_s1 = inlined_call_operand.vmem [shape: f32[16,16], index: 1, kind: input, shape index: {}]   ;;  %s4807_s2 = inlined_call_operand.vmem [shape: f32[48,64], index: 2, kind: input, shape index: {}]   ;;  %s4808_s5 = inlined_call_operand.vmem [shape: f32[8,128], index: 5, kind: input, shape index: {}]   ;;  %s4809_s3 = inlined_call_operand.vmem [shape: f32[16,10], index: 3, kind: input, shape index: {}]   ;;  %s4810_s4 = inlined_call_operand.vmem [shape: f32[10,4], index: 4, kind: input, shape index: {}]   ;;  %s4811_s6 = inlined_call_operand.vmem [shape: f32[128,4], index: 6, kind: output, shape index: {}]  }
   0x1   :  { %v37_v0 = vld [vmem:[%s4805_s0 + $0x8] sm:$0xff]  ;;  %v36_v1 = vld [vmem:[%s4805_s0] sm:$0xff]  ;;  %v3885_v6 = vld [vmem:[%s4807_s2 + $0x18] sm:$0xff]  ;;  %vm138_vm3 = vcmask 392192   ;;  %s3803_s21 = smov 96   ;;  %s3804_s22 = smov 112  }
   0x2   :  { %v3853_v2 = vld [vmem:[%s4806_s1] sm:$0xff]  ;;  %3200 = vmatprep.subr.msk.mxu1 %vm38_vm0, %v37_v0  ;;  %v3862_v3 = vld [vmem:[%s4806_s1 + $0x8] sm:$0xff]  ;;  %v3892_v7 = vld [vmem:[%s4807_s2 + $0x10] sm:$0xff]  ;;  %v3912_v11 = vshrl.u32 %v134_v10, 7  ;;  %v39_v18 = vsel %vm38_vm0, %v36_v1, 0.0  ;;  %v40_v21 = vsel %vm38_vm0, %v37_v0, 0.0 }
   0x3   :  { %3204 = vmatprep.mubr.msk.f32.mxu1 %vm41_vm1, %v3853_v2  ;;  %3201 = vmatpush3.msk.msra.mxu1 %vm38_vm0, %v37_v0  ;;  %v3873_v4 = vld [vmem:[%s4807_s2 + $0x28] sm:$0xff]  ;;  %v3878_v5 = vld [vmem:[%s4807_s2 + $0x20] sm:$0xff]  ;;  %s3805_s23 = smov 48   ;;  %s3806_s24 = smov 32   ;;  %vm2657_vm4 = vcmask 1041408   ;;  %vm2608_vm5 = vcmask 80896  }
   0x4   :  { %3226 = vmatprep.mubr.msk.f32.mxu0 %vm41_vm1, %v3853_v2  ;;  %3202 = vmatprep.subr.msk.mxu1 %vm38_vm0, %v36_v1  ;;  %v3901_v8 = vld [vmem:[%s4807_s2 + $0x8] sm:$0xff]  ;;  %v3907_v9 = vld [vmem:[%s4807_s2] sm:$0xff]  ;;  %v241_v12 = vsub.s32 2, %v3912_v11  ;;  %v136_v24 = vsub.s32 0, %v3912_v11  ;;  %v222_v32 = vsub.s32 1, %v3912_v11  ;;  %v288_v10 = vsub.s32 3, %v3912_v11 }
   0x5   :  { %3203 = vmatpush3.msk.msra.mxu1 %vm38_vm0, %v36_v1  ;;  %v3918_v14 = vld [vmem:[%s4808_s5] sm:$0xff]  ;;  %s3807_s25 = smov 88   ;;  %vm2902_vm6 = vcmask 31744  }
   0x6   :  { %3205 = vmatmul.mubr.msk.f32.vlgmr.msra.gmra.mxu1 %vm41_vm1, %v3862_v3  ;;  %3207 = vmatprep.subr.mxu1 %v3873_v4  ;;  %v3922_v16 = vrot.slane %v3918_v14, %v241_v12  ;;  %v3937_v25 = vrot.slane %v3918_v14, %v136_v24  ;;  %v3951_v33 = vrot.slane %v3918_v14, %v222_v32 }
   0x7   :  { %3208 = vmatpush3.msra.mxu1 %v3873_v4  ;;  %v3972_v12 = vrot.slane %v3918_v14, %v288_v10 }
   0x8   :  { %3209 = vmatprep.subr.mxu1 %v3878_v5  ;;  %v243_v17 = vmul.f32 0.0, %v3922_v16  ;;  %v224_v34 = vmul.f32 0.0, %v3951_v33 }
   0x9   :  { %3210 = vmatpush3.msra.mxu1 %v3878_v5 }
   0xa   :  { %3211 = vmatprep.subr.mxu1 %v3885_v6 }
   0xb   :  { %3212 = vmatpush3.msra.mxu1 %v3885_v6 }
   0xc   :  { %3213 = vmatprep.subr.mxu1 %v3892_v7 }
   0xd   :  { %3214 = vmatpush3.msra.mxu1 %v3892_v7 }
   0xe   :  { %3215 = vmatprep.subr.mxu1 %v3901_v8 }
   0xf   :  { %3216 = vmatpush3.msra.mxu1 %v3901_v8 }
  0x10   :  { %3217 = vmatprep.subr.mxu1 %v3907_v9 }
  0x11   :  { %3218 = vmatpush3.msra.mxu1 %v3907_v9 }
  0xc6   :  { %v3206_v13 = vpop.f32.mrf.mxu1 }
  0xc8   :  { %v114_v15 = vpop.f32.mrf.mxu1 }
  0xc9   :  { %125 = vrot.lane.b32.xlu0 %v114_v15, %s3801_s19 }
  0xcd   :  { %127 = vrot.lane.b32.xlu0 %v3206_v13, %s3801_s19 }
  0xd1   :  { %245 = vrot.lane.b32.xlu0 %v243_v17, %s3802_s20 }
 0x13b   :  { %v126_v19 = vpop.permute.xlu0 %125 }
 0x13c   :  { %v132_v20 = vsel %vm131_vm2, %v39_v18, %v126_v19 }
 0x13d   :  { %3219 = vmatprep.mubr.msk.f32.mxu1 %vm138_vm3, %v132_v20 }
 0x13f   :  { %v128_v22 = vpop.permute.xlu0 %127 }
 0x140   :  { %v133_v23 = vsel %vm131_vm2, %v40_v21, %v128_v22 }
 0x141   :  { %3220 = vmatmul.mubr.msk.f32.vlgmr.msra.gmra.mxu1 %vm138_vm3, %v133_v23 }
 0x142   :  { %3248 = vmatprep.mubr.msk.f32.mxu1 %vm41_vm1, %v3853_v2 }
 0x143   :  { %v246_v49 = vpop.permute.xlu0 %245 }
 0x201   :  { %v3221_v26 = vpop.f32.mrf.mxu1 }
 0x202   :  { %v3940_v27 = vadd.f32 %v3221_v26, %v3937_v25 }
 0x203   :  { %v211_v28 = vpop.f32.mrf.mxu1 }
 0x204   :  { %3440 = vtanh.f32 %v3940_v27  ;;  %v3944_v29 = vadd.f32 %v211_v28, %v3937_v25  ;;  %v226_v35 = vadd.f32 %v224_v34, %v3940_v27  ;;  %v249_v50 = vadd.f32 %v246_v49, %v3940_v27 }
 0x206   :  { %3442 = vtanh.f32 %v3944_v29  ;;  %v2930_v36 = vmul.f32 -1.442695, %v226_v35  ;;  %v225_v37 = vadd.f32 %v224_v34, %v3944_v29  ;;  %v2932_v51 = vmul.f32 -1.442695, %v249_v50 }
 0x207   :  { %v248_v52 = vadd.f32 %v246_v49, %v3944_v29 }
 0x208   :  { %3444 = vpow2.f32 %v2930_v36  ;;  %v2929_v38 = vmul.f32 -1.442695, %v225_v37 }
 0x209   :  { %v2931_v53 = vmul.f32 -1.442695, %v248_v52 }
 0x20a   :  { %3446 = vpow2.f32 %v2929_v38 }
 0x211   :  { %v3441_v30 = vpop.eup %3440 }
 0x212   :  { %270 = vrot.lane.b32.xlu1 %v3441_v30, %s3803_s21 }
 0x213   :  { %v3443_v31 = vpop.eup %3442 }
 0x215   :  { %v3445_v39 = vpop.eup %3444 }
 0x216   :  { %268 = vrot.lane.b32.xlu1 %v3443_v31, %s3803_s21  ;;  %v234_v40 = vadd.f32 1.0, %v3445_v39 }
 0x217   :  { %v3447_v41 = vpop.eup %3446 }
 0x218   :  { %3448 = vrcp.f32 %v234_v40  ;;  %v233_v42 = vadd.f32 1.0, %v3447_v41  ;;  %v2935_v41 = vld [vmem:[%s4805_s0 + $0x10] sm:$0xff] }
 0x21a   :  { %3450 = vrcp.f32 %v233_v42 }
 0x21b   :  { %3452 = vpow2.f32 %v2932_v51 }
 0x21c   :  { %3454 = vpow2.f32 %v2931_v53 }
 0x225   :  { %v3449_v43 = vpop.eup %3448 }
 0x227   :  { %v3451_v46 = vpop.eup %3450 }
 0x228   :  { %v3453_v54 = vpop.eup %3452 }
 0x229   :  { %v257_v55 = vadd.f32 1.0, %v3453_v54  ;;  %v3455_v56 = vpop.eup %3454 }
 0x22a   :  { %v256_v57 = vadd.f32 1.0, %v3455_v56 }
 0x22b   :  { %3456 = vrcp.f32 %v257_v55 }
 0x22c   :  { %3458 = vrcp.f32 %v256_v57 }
 0x238   :  { %v3457_v58 = vpop.eup %3456 }
 0x239   :  { %v265_v59 = vmul.f32 0.0, %v3457_v58  ;;  %v3459_v60 = vpop.eup %3458 }
 0x23a   :  { %v264_v63 = vmul.f32 0.0, %v3459_v60 }
 0x284   :  { %v271_v44 = vpop.permute.xlu1 %270 }
 0x285   :  { %v275_v45 = vmul.f32 %v3449_v43, %v271_v44 }
 0x287   :  { %280 = vrot.lane.b32.xlu1 %v275_v45, %s3802_s20 }
 0x288   :  { %v269_v47 = vpop.permute.xlu1 %268 }
 0x289   :  { %v274_v48 = vmul.f32 %v3451_v46, %v269_v47 }
 0x28b   :  { %278 = vrot.lane.b32.xlu0 %v274_v48, %s3802_s20 }
 0x2f9   :  { %v281_v61 = vpop.permute.xlu1 %280 }
 0x2fa   :  { %v3960_v62 = vadd.f32 %v281_v61, %v265_v59 }
 0x2fc   :  { %294 = vrot.lane.b32.xlu1 %v3960_v62, %s3804_s22  ;;  %3460 = vtanh.f32 %v3960_v62 }
 0x2fd   :  { %v279_v0 = vpop.permute.xlu0 %278 }
 0x2fe   :  { %v3964_v1 = vadd.f32 %v279_v0, %v264_v63 }
 0x300   :  { %292 = vrot.lane.b32.xlu0 %v3964_v1, %s3804_s22  ;;  %3462 = vtanh.f32 %v3964_v1 }
 0x309   :  { %v3461_v19 = vpop.eup %3460 }
 0x30d   :  { %v3463_v14 = vpop.eup %3462 }
 0x36e   :  { %v3974_v13 = vpop.permute.xlu1 %294 }
 0x36f   :  { %v299_v15 = vmul.f32 %v3974_v13, %v3972_v12  ;;  %v530_v56 = vmul.f32 %v3974_v13, %v3922_v16  ;;  %v514_v58 = vmul.f32 %v3974_v13, %v3951_v33 }
 0x371   :  { %304 = vrot.lane.b32.xlu1 %v299_v15, %s3805_s23 }
 0x372   :  { %v3979_v17 = vpop.permute.xlu0 %292 }
 0x373   :  { %v298_v18 = vmul.f32 %v3979_v17, %v3972_v12  ;;  %v529_v57 = vmul.f32 %v3979_v17, %v3922_v16  ;;  %v513_v59 = vmul.f32 %v3979_v17, %v3951_v33 }
 0x375   :  { %328 = vrot.lane.b32.xlu1 %v3461_v19, %s3806_s24  ;;  %302 = vrot.lane.b32.xlu0 %v298_v18, %s3805_s23 }
 0x379   :  { %326 = vrot.lane.b32.xlu0 %v3463_v14, %s3806_s24 }
 0x3e3   :  { %v305_v20 = vpop.permute.xlu1 %304 }
 0x3e4   :  { %v309_v21 = vadd.f32 %v305_v20, %v3940_v27 }
 0x3e6   :  { %v2934_v22 = vmul.f32 -1.442695, %v309_v21 }
 0x3e7   :  { %v303_v23 = vpop.permute.xlu0 %302  ;;  %v329_v35 = vpop.permute.xlu1 %328 }
 0x3e8   :  { %3464 = vpow2.f32 %v2934_v22  ;;  %v308_v24 = vadd.f32 %v303_v23, %v3944_v29  ;;  %v2936_v29 = vld [vmem:[%s4805_s0 + $0x18] sm:$0xff] }
 0x3ea   :  { %v2933_v26 = vmul.f32 -1.442695, %v308_v24 }
 0x3eb   :  { %v327_v37 = vpop.permute.xlu0 %326 }
 0x3ec   :  { %3466 = vpow2.f32 %v2933_v26 }
 0x3f5   :  { %v3465_v28 = vpop.eup %3464 }
 0x3f6   :  { %v317_v30 = vadd.f32 1.0, %v3465_v28 }
 0x3f8   :  { %3468 = vrcp.f32 %v317_v30 }
 0x3f9   :  { %v3467_v31 = vpop.eup %3466 }
 0x3fa   :  { %v316_v32 = vadd.f32 1.0, %v3467_v31 }
 0x3fc   :  { %3470 = vrcp.f32 %v316_v32 }
 0x405   :  { %v3469_v34 = vpop.eup %3468 }
 0x406   :  { %v3988_v36 = vmul.f32 %v3469_v34, %v329_v35 }
 0x408   :  { %341 = vrot.lane.b32.xlu1 %v3988_v36, %s3807_s25 }
 0x409   :  { %v3471_v27 = vpop.eup %3470 }
 0x40a   :  { %v3992_v38 = vmul.f32 %v3471_v27, %v327_v37 }
 0x40c   :  { %339 = vrot.lane.b32.xlu0 %v3992_v38, %s3807_s25 }
 0x47a   :  { %v342_v39 = vpop.permute.xlu1 %341 }
 0x47b   :  { %v346_v40 = vsel %vm38_vm0, %v2936_v29, %v342_v39 }
 0x47c   :  { %3222 = vmatprep.subr.mxu0 %v346_v40 }
 0x47d   :  { %3223 = vmatpush3.msra.mxu0 %v346_v40 }
 0x47e   :  { %v340_v42 = vpop.permute.xlu0 %339 }
 0x47f   :  { %v345_v43 = vsel %vm38_vm0, %v2935_v41, %v340_v42 }
 0x480   :  { %3224 = vmatprep.subr.mxu0 %v345_v43 }
 0x481   :  { %3225 = vmatpush3.msra.mxu0 %v345_v43 }
 0x482   :  { %3227 = vmatmul.mubr.msk.f32.vlgmr.msra.gmra.mxu0 %vm41_vm1, %v3862_v3  ;;  %3229 = vmatprep.subr.mxu0 %v3873_v4 }
 0x483   :  { %3230 = vmatpush3.msra.mxu0 %v3873_v4 }
 0x484   :  { %3231 = vmatprep.subr.mxu0 %v3878_v5 }
 0x485   :  { %3232 = vmatpush3.msra.mxu0 %v3878_v5 }
 0x486   :  { %3233 = vmatprep.subr.mxu0 %v3885_v6 }
 0x487   :  { %3234 = vmatpush3.msra.mxu0 %v3885_v6 }
 0x488   :  { %3235 = vmatprep.subr.mxu0 %v3892_v7 }
 0x489   :  { %3236 = vmatpush3.msra.mxu0 %v3892_v7 }
 0x48a   :  { %3237 = vmatprep.subr.mxu0 %v3901_v8 }
 0x48b   :  { %3238 = vmatpush3.msra.mxu0 %v3901_v8 }
 0x48c   :  { %3239 = vmatprep.subr.mxu0 %v3907_v9 }
 0x48d   :  { %3240 = vmatpush3.msra.mxu0 %v3907_v9 }
 0x542   :  { %v3228_v44 = vpop.f32.mrf.mxu0 }
 0x543   :  { %426 = vrot.lane.b32.xlu0 %v3228_v44, %s3801_s19 }
 0x544   :  { %v413_v45 = vpop.f32.mrf.mxu0 }
 0x545   :  { %424 = vrot.lane.b32.xlu1 %v413_v45, %s3801_s19 }
 0x5b5   :  { %v427_v46 = vpop.permute.xlu0 %426 }
 0x5b6   :  { %v431_v49 = vsel %vm131_vm2, %v346_v40, %v427_v46 }
 0x5b7   :  { %v425_v47 = vpop.permute.xlu1 %424 }
 0x5b8   :  { %v430_v48 = vsel %vm131_vm2, %v345_v43, %v425_v47 }
 0x5b9   :  { %3241 = vmatprep.mubr.msk.f32.mxu0 %vm138_vm3, %v430_v48 }
 0x5ba   :  { %3242 = vmatmul.mubr.msk.f32.vlgmr.msra.gmra.mxu0 %vm138_vm3, %v431_v49 }
 0x5bb   :  { %3270 = vmatprep.mubr.msk.f32.mxu0 %vm41_vm1, %v3853_v2 }
 0x67a   :  { %v3243_v50 = vpop.f32.mrf.mxu0 }
 0x67b   :  { %v4027_v51 = vadd.f32 %v3243_v50, %v3937_v25 }
 0x67c   :  { %v504_v52 = vpop.f32.mrf.mxu0 }
 0x67d   :  { %3472 = vtanh.f32 %v4027_v51  ;;  %v4031_v53 = vadd.f32 %v504_v52, %v3937_v25  ;;  %v516_v60 = vadd.f32 %v514_v58, %v4027_v51 }
 0x67f   :  { %3474 = vtanh.f32 %v4031_v53  ;;  %v515_v61 = vadd.f32 %v513_v59, %v4031_v53  ;;  %v2942_v63 = vmul.f32 -1.442695, %v516_v60 }
 0x681   :  { %v2941_v0 = vmul.f32 -1.442695, %v515_v61  ;;  %3476 = vpow2.f32 %v2942_v63 }
 0x683   :  { %3478 = vpow2.f32 %v2941_v0 }
 0x68a   :  { %v3473_v54 = vpop.eup %3472 }
 0x68b   :  { %561 = vrot.lane.b32.xlu1 %v3473_v54, %s3803_s21 }
 0x68c   :  { %v3475_v55 = vpop.eup %3474 }
 0x68d   :  { %559 = vrot.lane.b32.xlu0 %v3475_v55, %s3803_s21 }
 0x68e   :  { %v3477_v10 = vpop.eup %3476 }
 0x68f   :  { %535 = vrot.lane.b32.xlu1 %v530_v56, %s3802_s20  ;;  %v524_v18 = vadd.f32 1.0, %v3477_v10 }
 0x690   :  { %v3479_v15 = vpop.eup %3478 }
 0x691   :  { %533 = vrot.lane.b32.xlu0 %v529_v57, %s3802_s20  ;;  %v523_v19 = vadd.f32 1.0, %v3479_v15  ;;  %3480 = vrcp.f32 %v524_v18 }
 0x693   :  { %3482 = vrcp.f32 %v523_v19  ;;  %v2947_v19 = vld [vmem:[%s4805_s0 + $0x20] sm:$0xff] }
 0x69e   :  { %v3481_v14 = vpop.eup %3480 }
 0x6a0   :  { %v3483_v21 = vpop.eup %3482 }
 0x6fd   :  { %v562_v20 = vpop.permute.xlu1 %561 }
 0x6fe   :  { %v566_v13 = vmul.f32 %v3481_v14, %v562_v20 }
 0x6ff   :  { %v560_v22 = vpop.permute.xlu0 %559 }
 0x700   :  { %v565_v17 = vmul.f32 %v3483_v21, %v560_v22  ;;  %571 = vrot.lane.b32.xlu1 %v566_v13, %s3802_s20 }
 0x701   :  { %v536_v23 = vpop.permute.xlu1 %535 }
 0x702   :  { %569 = vrot.lane.b32.xlu0 %v565_v17, %s3802_s20  ;;  %v540_v26 = vadd.f32 %v536_v23, %v4027_v51 }
 0x703   :  { %v534_v24 = vpop.permute.xlu0 %533 }
 0x704   :  { %v539_v28 = vadd.f32 %v534_v24, %v4031_v53  ;;  %v2944_v30 = vmul.f32 -1.442695, %v540_v26 }
 0x706   :  { %v2943_v31 = vmul.f32 -1.442695, %v539_v28  ;;  %3484 = vpow2.f32 %v2944_v30 }
 0x708   :  { %3486 = vpow2.f32 %v2943_v31 }
 0x713   :  { %v3485_v32 = vpop.eup %3484 }
 0x714   :  { %v548_v35 = vadd.f32 1.0, %v3485_v32 }
 0x715   :  { %v3487_v34 = vpop.eup %3486 }
 0x716   :  { %v547_v27 = vadd.f32 1.0, %v3487_v34  ;;  %3488 = vrcp.f32 %v548_v35 }
 0x718   :  { %3490 = vrcp.f32 %v547_v27 }
 0x723   :  { %v3489_v37 = vpop.eup %3488 }
 0x724   :  { %v556_v39 = vmul.f32 %v3489_v37, %v3960_v62 }
 0x725   :  { %v3491_v29 = vpop.eup %3490 }
 0x726   :  { %v555_v42 = vmul.f32 %v3491_v29, %v3964_v1 }
 0x772   :  { %v572_v40 = vpop.permute.xlu1 %571 }
 0x773   :  { %v4053_v41 = vadd.f32 %v572_v40, %v556_v39 }
 0x774   :  { %v570_v43 = vpop.permute.xlu0 %569 }
 0x775   :  { %v4056_v44 = vadd.f32 %v570_v43, %v555_v42  ;;  %581 = vrot.lane.b32.xlu1 %v4053_v41, %s3804_s22  ;;  %3492 = vtanh.f32 %v4053_v41 }
 0x777   :  { %579 = vrot.lane.b32.xlu0 %v4056_v44, %s3804_s22  ;;  %3494 = vtanh.f32 %v4056_v44 }
 0x782   :  { %v3493_v47 = vpop.eup %3492 }
 0x784   :  { %v3495_v48 = vpop.eup %3494 }
 0x7e7   :  { %v4064_v45 = vpop.permute.xlu1 %581 }
 0x7e8   :  { %v586_v62 = vmul.f32 %v4064_v45, %v3972_v12  ;;  %v817_v27 = vmul.f32 %v4064_v45, %v3922_v16  ;;  %v801_v29 = vmul.f32 %v4064_v45, %v3951_v33 }
 0x7e9   :  { %v4068_v46 = vpop.permute.xlu0 %579 }
 0x7ea   :  { %591 = vrot.lane.b32.xlu1 %v586_v62, %s3805_s23  ;;  %v585_v1 = vmul.f32 %v4068_v46, %v3972_v12  ;;  %v816_v37 = vmul.f32 %v4068_v46, %v3922_v16  ;;  %v800_v39 = vmul.f32 %v4068_v46, %v3951_v33 }
 0x7ec   :  { %589 = vrot.lane.b32.xlu0 %v585_v1, %s3805_s23 }
 0x7ee   :  { %615 = vrot.lane.b32.xlu1 %v3493_v47, %s3806_s24 }
 0x7f0   :  { %613 = vrot.lane.b32.xlu0 %v3495_v48, %s3806_s24 }
 0x85c   :  { %v592_v49 = vpop.permute.xlu1 %591 }
 0x85d   :  { %v596_v50 = vadd.f32 %v592_v49, %v4027_v51 }
 0x85e   :  { %v590_v52 = vpop.permute.xlu0 %589 }
 0x85f   :  { %v2946_v54 = vmul.f32 -1.442695, %v596_v50  ;;  %v595_v55 = vadd.f32 %v590_v52, %v4031_v53  ;;  %v2948_v53 = vld [vmem:[%s4805_s0 + $0x28] sm:$0xff] }
 0x860   :  { %v616_v63 = vpop.permute.xlu1 %615 }
 0x861   :  { %3496 = vpow2.f32 %v2946_v54  ;;  %v2945_v56 = vmul.f32 -1.442695, %v595_v55 }
 0x862   :  { %v614_v15 = vpop.permute.xlu0 %613 }
 0x863   :  { %3498 = vpow2.f32 %v2945_v56 }
 0x86e   :  { %v3497_v57 = vpop.eup %3496 }
 0x86f   :  { %v604_v58 = vadd.f32 1.0, %v3497_v57 }
 0x870   :  { %v3499_v59 = vpop.eup %3498 }
 0x871   :  { %3500 = vrcp.f32 %v604_v58  ;;  %v603_v60 = vadd.f32 1.0, %v3499_v59 }
 0x873   :  { %3502 = vrcp.f32 %v603_v60 }
 0x87e   :  { %v3501_v61 = vpop.eup %3500 }
 0x87f   :  { %v4078_v0 = vmul.f32 %v3501_v61, %v616_v63 }
 0x880   :  { %v3503_v10 = vpop.eup %3502 }
 0x881   :  { %v4080_v51 = vmul.f32 %v3503_v10, %v614_v15  ;;  %628 = vrot.lane.b32.xlu1 %v4078_v0, %s3807_s25 }
 0x883   :  { %626 = vrot.lane.b32.xlu0 %v4080_v51, %s3807_s25 }
 0x8f3   :  { %v629_v18 = vpop.permute.xlu1 %628 }
 0x8f4   :  { %v633_v14 = vsel %vm38_vm0, %v2948_v53, %v629_v18 }
 0x8f5   :  { %3244 = vmatprep.subr.mxu1 %v633_v14  ;;  %v627_v20 = vpop.permute.xlu0 %626 }
 0x8f6   :  { %3245 = vmatpush3.msra.mxu1 %v633_v14  ;;  %v632_v13 = vsel %vm38_vm0, %v2947_v19, %v627_v20 }
 0x8f7   :  { %3246 = vmatprep.subr.mxu1 %v632_v13 }
 0x8f8   :  { %3247 = vmatpush3.msra.mxu1 %v632_v13 }
 0x8f9   :  { %3249 = vmatmul.mubr.msk.f32.vlgmr.msra.gmra.mxu1 %vm41_vm1, %v3862_v3  ;;  %3251 = vmatprep.subr.mxu1 %v3873_v4 }
 0x8fa   :  { %3252 = vmatpush3.msra.mxu1 %v3873_v4 }
 0x8fb   :  { %3253 = vmatprep.subr.mxu1 %v3878_v5 }
 0x8fc   :  { %3254 = vmatpush3.msra.mxu1 %v3878_v5 }
 0x8fd   :  { %3255 = vmatprep.subr.mxu1 %v3885_v6 }
 0x8fe   :  { %3256 = vmatpush3.msra.mxu1 %v3885_v6 }
 0x8ff   :  { %3257 = vmatprep.subr.mxu1 %v3892_v7 }
 0x900   :  { %3258 = vmatpush3.msra.mxu1 %v3892_v7 }
 0x901   :  { %3259 = vmatprep.subr.mxu1 %v3901_v8 }
 0x902   :  { %3260 = vmatpush3.msra.mxu1 %v3901_v8 }
 0x903   :  { %3261 = vmatprep.subr.mxu1 %v3907_v9 }
 0x904   :  { %3262 = vmatpush3.msra.mxu1 %v3907_v9 }
 0x9b9   :  { %v3250_v21 = vpop.f32.mrf.mxu1 }
 0x9ba   :  { %713 = vrot.lane.b32.xlu0 %v3250_v21, %s3801_s19 }
 0x9bb   :  { %v700_v22 = vpop.f32.mrf.mxu1 }
 0x9bc   :  { %711 = vrot.lane.b32.xlu1 %v700_v22, %s3801_s19 }
 0xa2c   :  { %v714_v17 = vpop.permute.xlu0 %713 }
 0xa2d   :  { %v718_v26 = vsel %vm131_vm2, %v633_v14, %v714_v17 }
 0xa2e   :  { %v712_v23 = vpop.permute.xlu1 %711 }
 0xa2f   :  { %v717_v24 = vsel %vm131_vm2, %v632_v13, %v712_v23 }
 0xa30   :  { %3263 = vmatprep.mubr.msk.f32.mxu1 %vm138_vm3, %v717_v24 }
 0xa31   :  { %3264 = vmatmul.mubr.msk.f32.vlgmr.msra.gmra.mxu1 %vm138_vm3, %v718_v26 }
 0xa32   :  { %3292 = vmatprep.mubr.msk.f32.mxu1 %vm41_vm1, %v3853_v2 }
 0xaf1   :  { %v3265_v28 = vpop.f32.mrf.mxu1 }
 0xaf2   :  { %v4117_v30 = vadd.f32 %v3265_v28, %v3937_v25 }
 0xaf3   :  { %v791_v31 = vpop.f32.mrf.mxu1 }
 0xaf4   :  { %3504 = vtanh.f32 %v4117_v30  ;;  %v4121_v32 = vadd.f32 %v791_v31, %v3937_v25  ;;  %v803_v40 = vadd.f32 %v801_v29, %v4117_v30 }
 0xaf6   :  { %3506 = vtanh.f32 %v4121_v32  ;;  %v802_v42 = vadd.f32 %v800_v39, %v4121_v32  ;;  %v2954_v43 = vmul.f32 -1.442695, %v803_v40 }
 0xaf8   :  { %v2953_v62 = vmul.f32 -1.442695, %v802_v42  ;;  %3508 = vpow2.f32 %v2954_v43 }
 0xafa   :  { %3510 = vpow2.f32 %v2953_v62 }
 0xb01   :  { %v3505_v34 = vpop.eup %3504 }
 0xb02   :  { %848 = vrot.lane.b32.xlu1 %v3505_v34, %s3803_s21 }
 0xb03   :  { %v3507_v35 = vpop.eup %3506 }
 0xb04   :  { %846 = vrot.lane.b32.xlu0 %v3507_v35, %s3803_s21 }
 0xb05   :  { %v3509_v1 = vpop.eup %3508 }
 0xb06   :  { %822 = vrot.lane.b32.xlu1 %v817_v27, %s3802_s20  ;;  %v811_v48 = vadd.f32 1.0, %v3509_v1 }
 0xb07   :  { %v3511_v47 = vpop.eup %3510 }
 0xb08   :  { %820 = vrot.lane.b32.xlu0 %v816_v37, %s3802_s20  ;;  %v810_v49 = vadd.f32 1.0, %v3511_v47  ;;  %3512 = vrcp.f32 %v811_v48 }
 0xb0a   :  { %3514 = vrcp.f32 %v810_v49 }
 0xb15   :  { %v3513_v50 = vpop.eup %3512 }
 0xb17   :  { %v3515_v54 = vpop.eup %3514 }
 0xb74   :  { %v849_v52 = vpop.permute.xlu1 %848 }
 0xb75   :  { %v853_v45 = vmul.f32 %v3513_v50, %v849_v52  ;;  %v2959_v52 = vld [vmem:[%s4805_s0 + $0x30] sm:$0xff] }
 0xb76   :  { %v847_v55 = vpop.permute.xlu0 %846 }
 0xb77   :  { %v852_v46 = vmul.f32 %v3515_v54, %v847_v55  ;;  %858 = vrot.lane.b32.xlu1 %v853_v45, %s3802_s20 }
 0xb78   :  { %v823_v56 = vpop.permute.xlu1 %822 }
 0xb79   :  { %856 = vrot.lane.b32.xlu0 %v852_v46, %s3802_s20  ;;  %v827_v58 = vadd.f32 %v823_v56, %v4117_v30 }
 0xb7a   :  { %v821_v57 = vpop.permute.xlu0 %820 }
 0xb7b   :  { %v826_v59 = vadd.f32 %v821_v57, %v4121_v32  ;;  %v2956_v60 = vmul.f32 -1.442695, %v827_v58 }
 0xb7d   :  { %v2955_v61 = vmul.f32 -1.442695, %v826_v59  ;;  %3516 = vpow2.f32 %v2956_v60 }
 0xb7f   :  { %3518 = vpow2.f32 %v2955_v61 }
 0xb8a   :  { %v3517_v63 = vpop.eup %3516 }
 0xb8b   :  { %v835_v15 = vadd.f32 1.0, %v3517_v63 }
 0xb8c   :  { %v3519_v10 = vpop.eup %3518 }
 0xb8d   :  { %v834_v53 = vadd.f32 1.0, %v3519_v10  ;;  %3520 = vrcp.f32 %v835_v15 }
 0xb8f   :  { %3522 = vrcp.f32 %v834_v53 }
 0xb9a   :  { %v3521_v18 = vpop.eup %3520 }
 0xb9b   :  { %v843_v14 = vmul.f32 %v3521_v18, %v4053_v41 }
 0xb9c   :  { %v3523_v19 = vpop.eup %3522 }
 0xb9d   :  { %v842_v21 = vmul.f32 %v3523_v19, %v4056_v44 }
 0xbe9   :  { %v859_v20 = vpop.permute.xlu1 %858 }
 0xbea   :  { %v4143_v13 = vadd.f32 %v859_v20, %v843_v14 }
 0xbeb   :  { %v857_v22 = vpop.permute.xlu0 %856 }
 0xbec   :  { %v4146_v17 = vadd.f32 %v857_v22, %v842_v21  ;;  %868 = vrot.lane.b32.xlu1 %v4143_v13, %s3804_s22  ;;  %3524 = vtanh.f32 %v4143_v13 }
 0xbee   :  { %866 = vrot.lane.b32.xlu0 %v4146_v17, %s3804_s22  ;;  %3526 = vtanh.f32 %v4146_v17 }
 0xbf9   :  { %v3525_v26 = vpop.eup %3524 }
 0xbfb   :  { %v3527_v28 = vpop.eup %3526 }
 0xc5e   :  { %v4154_v23 = vpop.permute.xlu1 %868 }
 0xc5f   :  { %v873_v41 = vmul.f32 %v4154_v23, %v3972_v12  ;;  %v1088_v61 = vmul.f32 %v4154_v23, %v3951_v33 }
 0xc60   :  { %v4158_v24 = vpop.permute.xlu0 %866 }
 0xc61   :  { %878 = vrot.lane.b32.xlu1 %v873_v41, %s3805_s23  ;;  %v872_v44 = vmul.f32 %v4158_v24, %v3972_v12  ;;  %v1103_v60 = vmul.f32 %v4158_v24, %v3922_v16  ;;  %v1087_v63 = vmul.f32 %v4158_v24, %v3951_v33 }
 0xc63   :  { %876 = vrot.lane.b32.xlu0 %v872_v44, %s3805_s23 }
 0xc65   :  { %902 = vrot.lane.b32.xlu1 %v3525_v26, %s3806_s24 }
 0xc67   :  { %900 = vrot.lane.b32.xlu0 %v3527_v28, %s3806_s24 }
 0xcd3   :  { %v879_v31 = vpop.permute.xlu1 %878 }
 0xcd4   :  { %v883_v34 = vadd.f32 %v879_v31, %v4117_v30 }
 0xcd5   :  { %v877_v35 = vpop.permute.xlu0 %876 }
 0xcd6   :  { %v2958_v27 = vmul.f32 -1.442695, %v883_v34  ;;  %v882_v37 = vadd.f32 %v877_v35, %v4121_v32  ;;  %v2960_v32 = vld [vmem:[%s4805_s0 + $0x38] sm:$0xff] }
 0xcd7   :  { %v903_v1 = vpop.permute.xlu1 %902 }
 0xcd8   :  { %3528 = vpow2.f32 %v2958_v27  ;;  %v2957_v29 = vmul.f32 -1.442695, %v882_v37 }
 0xcd9   :  { %v901_v49 = vpop.permute.xlu0 %900 }
 0xcda   :  { %3530 = vpow2.f32 %v2957_v29 }
 0xce5   :  { %v3529_v39 = vpop.eup %3528 }
 0xce6   :  { %v891_v40 = vadd.f32 1.0, %v3529_v39 }
 0xce7   :  { %v3531_v42 = vpop.eup %3530 }
 0xce8   :  { %3532 = vrcp.f32 %v891_v40  ;;  %v890_v43 = vadd.f32 1.0, %v3531_v42 }
 0xcea   :  { %3534 = vrcp.f32 %v890_v43 }
 0xcf5   :  { %v3533_v62 = vpop.eup %3532 }
 0xcf6   :  { %v4168_v47 = vmul.f32 %v3533_v62, %v903_v1 }
 0xcf7   :  { %v3535_v48 = vpop.eup %3534 }
 0xcf8   :  { %v4170_v30 = vmul.f32 %v3535_v48, %v901_v49  ;;  %915 = vrot.lane.b32.xlu1 %v4168_v47, %s3807_s25 }
 0xcfa   :  { %913 = vrot.lane.b32.xlu0 %v4170_v30, %s3807_s25 }
 0xd6a   :  { %v916_v50 = vpop.permute.xlu1 %915 }
 0xd6b   :  { %v920_v45 = vsel %vm38_vm0, %v2960_v32, %v916_v50 }
 0xd6c   :  { %3266 = vmatprep.subr.mxu0 %v920_v45  ;;  %v914_v54 = vpop.permute.xlu0 %913 }
 0xd6d   :  { %3267 = vmatpush3.msra.mxu0 %v920_v45  ;;  %v919_v55 = vsel %vm38_vm0, %v2959_v52, %v914_v54 }
 0xd6e   :  { %3268 = vmatprep.subr.mxu0 %v919_v55 }
 0xd6f   :  { %3269 = vmatpush3.msra.mxu0 %v919_v55 }
 0xd70   :  { %3271 = vmatmul.mubr.msk.f32.vlgmr.msra.gmra.mxu0 %vm41_vm1, %v3862_v3  ;;  %3273 = vmatprep.subr.mxu0 %v3873_v4 }
 0xd71   :  { %3274 = vmatpush3.msra.mxu0 %v3873_v4 }
 0xd72   :  { %3275 = vmatprep.subr.mxu0 %v3878_v5 }
 0xd73   :  { %3276 = vmatpush3.msra.mxu0 %v3878_v5 }
 0xd74   :  { %3277 = vmatprep.subr.mxu0 %v3885_v6 }
 0xd75   :  { %3278 = vmatpush3.msra.mxu0 %v3885_v6 }
 0xd76   :  { %3279 = vmatprep.subr.mxu0 %v3892_v7 }
 0xd77   :  { %3280 = vmatpush3.msra.mxu0 %v3892_v7 }
 0xd78   :  { %3281 = vmatprep.subr.mxu0 %v3901_v8 }
 0xd79   :  { %3282 = vmatpush3.msra.mxu0 %v3901_v8 }
 0xd7a   :  { %3283 = vmatprep.subr.mxu0 %v3907_v9 }
 0xd7b   :  { %3284 = vmatpush3.msra.mxu0 %v3907_v9 }
 0xe30   :  { %v3272_v3 = vpop.f32.mrf.mxu0 }
 0xe31   :  { %1000 = vrot.lane.b32.xlu0 %v3272_v3, %s3801_s19 }
 0xe32   :  { %v987_v4 = vpop.f32.mrf.mxu0 }
 0xe33   :  { %998 = vrot.lane.b32.xlu1 %v987_v4, %s3801_s19 }
 0xea3   :  { %v1001_v5 = vpop.permute.xlu0 %1000 }
 0xea4   :  { %v1005_v7 = vsel %vm131_vm2, %v920_v45, %v1001_v5 }
 0xea5   :  { %v999_v6 = vpop.permute.xlu1 %998 }
 0xea6   :  { %v1004_v46 = vsel %vm131_vm2, %v919_v55, %v999_v6 }
 0xea7   :  { %3285 = vmatprep.mubr.msk.f32.mxu0 %vm138_vm3, %v1004_v46 }
 0xea8   :  { %3286 = vmatmul.mubr.msk.f32.vlgmr.msra.gmra.mxu0 %vm138_vm3, %v1005_v7 }
 0xea9   :  { %3314 = vmatprep.mubr.msk.f32.mxu0 %vm41_vm1, %v3853_v2  ;;  %v1104_v2 = vmul.f32 %v4154_v23, %v3922_v16 }
 0xf68   :  { %v3287_v8 = vpop.f32.mrf.mxu0 }
 0xf69   :  { %v4207_v9 = vadd.f32 %v3287_v8, %v3937_v25 }
 0xf6a   :  { %v1078_v56 = vpop.f32.mrf.mxu0 }
 0xf6b   :  { %3536 = vtanh.f32 %v4207_v9  ;;  %v4211_v57 = vadd.f32 %v1078_v56, %v3937_v25  ;;  %v1090_v10 = vadd.f32 %v1088_v61, %v4207_v9 }
 0xf6d   :  { %3538 = vtanh.f32 %v4211_v57  ;;  %v1089_v15 = vadd.f32 %v1087_v63, %v4211_v57  ;;  %v2966_v53 = vmul.f32 -1.442695, %v1090_v10 }
 0xf6f   :  { %v2965_v18 = vmul.f32 -1.442695, %v1089_v15  ;;  %3540 = vpow2.f32 %v2966_v53 }
 0xf71   :  { %3542 = vpow2.f32 %v2965_v18  ;;  %v2971_v18 = vld [vmem:[%s4805_s0 + $0x40] sm:$0xff] }
 0xf78   :  { %v3537_v58 = vpop.eup %3536 }
 0xf79   :  { %1135 = vrot.lane.b32.xlu1 %v3537_v58, %s3803_s21 }
 0xf7a   :  { %v3539_v59 = vpop.eup %3538 }
 0xf7b   :  { %1133 = vrot.lane.b32.xlu0 %v3539_v59, %s3803_s21 }
 0xf7c   :  { %v3541_v19 = vpop.eup %3540 }
 0xf7d   :  { %1109 = vrot.lane.b32.xlu1 %v1104_v2, %s3802_s20  ;;  %v1098_v20 = vadd.f32 1.0, %v3541_v19 }
 0xf7e   :  { %v3543_v14 = vpop.eup %3542 }
 0xf7f   :  { %1107 = vrot.lane.b32.xlu0 %v1103_v60, %s3802_s20  ;;  %v1097_v21 = vadd.f32 1.0, %v3543_v14  ;;  %3544 = vrcp.f32 %v1098_v20 }
 0xf81   :  { %3546 = vrcp.f32 %v1097_v21  ;;  %v4277_v21 = vld [vmem:[%s4806_s1 + $0x8] sm:$0xff] }
 0xf8c   :  { %v3545_v22 = vpop.eup %3544 }
 0xf8e   :  { %v3547_v44 = vpop.eup %3546 }
 0xfeb   :  { %v1136_v41 = vpop.permute.xlu1 %1135 }
 0xfec   :  { %v1140_v23 = vmul.f32 %v3545_v22, %v1136_v41  ;;  %v4284_v22 = vld [vmem:[%s4807_s2 + $0x28] sm:$0xff]  ;;  %v4291_v41 = vld [vmem:[%s4807_s2 + $0x20] sm:$0xff] }
 0xfed   :  { %v1134_v26 = vpop.permute.xlu0 %1133 }
 0xfee   :  { %v1139_v24 = vmul.f32 %v3547_v44, %v1134_v26  ;;  %1145 = vrot.lane.b32.xlu1 %v1140_v23, %s3802_s20  ;;  %v4298_v23 = vld [vmem:[%s4807_s2 + $0x18] sm:$0xff]  ;;  %v4305_v44 = vld [vmem:[%s4807_s2 + $0x10] sm:$0xff]  ;;  %v4312_v26 = vld [vmem:[%s4807_s2 + $0x8] sm:$0xff] }
 0xfef   :  { %v1110_v28 = vpop.permute.xlu1 %1109 }
 0xff0   :  { %1143 = vrot.lane.b32.xlu0 %v1139_v24, %s3802_s20  ;;  %v1114_v34 = vadd.f32 %v1110_v28, %v4207_v9  ;;  %v4319_v24 = vld [vmem:[%s4807_s2] sm:$0xff] }
 0xff1   :  { %v1108_v31 = vpop.permute.xlu0 %1107 }
 0xff2   :  { %v1113_v35 = vadd.f32 %v1108_v31, %v4211_v57  ;;  %v2968_v27 = vmul.f32 -1.442695, %v1114_v34 }
 0xff4   :  { %v2967_v37 = vmul.f32 -1.442695, %v1113_v35  ;;  %3548 = vpow2.f32 %v2968_v27 }
 0xff6   :  { %3550 = vpow2.f32 %v2967_v37 }
0x1001   :  { %v3549_v29 = vpop.eup %3548 }
0x1002   :  { %v1122_v40 = vadd.f32 1.0, %v3549_v29  ;;  %v4332_v29 = vld [vmem:[%s4806_s1] sm:$0xff] }
0x1003   :  { %v3551_v39 = vpop.eup %3550 }
0x1004   :  { %v1121_v42 = vadd.f32 1.0, %v3551_v39  ;;  %3552 = vrcp.f32 %v1122_v40 }
0x1006   :  { %3554 = vrcp.f32 %v1121_v42 }
0x1011   :  { %v3553_v43 = vpop.eup %3552 }
0x1012   :  { %v1130_v1 = vmul.f32 %v3553_v43, %v4143_v13 }
0x1013   :  { %v3555_v62 = vpop.eup %3554 }
0x1014   :  { %v1129_v32 = vmul.f32 %v3555_v62, %v4146_v17 }
0x1060   :  { %v1146_v48 = vpop.permute.xlu1 %1145 }
0x1061   :  { %v4233_v49 = vadd.f32 %v1146_v48, %v1130_v1 }
0x1062   :  { %v1144_v50 = vpop.permute.xlu0 %1143 }
0x1063   :  { %v4236_v52 = vadd.f32 %v1144_v50, %v1129_v32  ;;  %1155 = vrot.lane.b32.xlu1 %v4233_v49, %s3804_s22  ;;  %3556 = vtanh.f32 %v4233_v49 }
0x1065   :  { %1153 = vrot.lane.b32.xlu0 %v4236_v52, %s3804_s22  ;;  %3558 = vtanh.f32 %v4236_v52 }
0x1070   :  { %v3557_v55 = vpop.eup %3556 }
0x1072   :  { %v3559_v3 = vpop.eup %3558 }
0x10d5   :  { %v4244_v45 = vpop.permute.xlu1 %1155 }
0x10d6   :  { %v1160_v13 = vmul.f32 %v4244_v45, %v3972_v12  ;;  %v1391_v48 = vmul.f32 %v4244_v45, %v3922_v16  ;;  %v1375_v50 = vmul.f32 %v4244_v45, %v3951_v33 }
0x10d7   :  { %v4248_v54 = vpop.permute.xlu0 %1153 }
0x10d8   :  { %v1159_v17 = vmul.f32 %v4248_v54, %v3972_v12  ;;  %1165 = vrot.lane.b32.xlu1 %v1160_v13, %s3805_s23  ;;  %v1390_v32 = vmul.f32 %v4248_v54, %v3922_v16  ;;  %v1374_v13 = vmul.f32 %v4248_v54, %v3951_v33 }
0x10da   :  { %1163 = vrot.lane.b32.xlu0 %v1159_v17, %s3805_s23 }
0x10dc   :  { %1189 = vrot.lane.b32.xlu1 %v3557_v55, %s3806_s24 }
0x10de   :  { %1187 = vrot.lane.b32.xlu0 %v3559_v3, %s3806_s24 }
0x114a   :  { %v1166_v4 = vpop.permute.xlu1 %1165 }
0x114b   :  { %v1170_v5 = vadd.f32 %v1166_v4, %v4207_v9 }
0x114c   :  { %v1164_v6 = vpop.permute.xlu0 %1163 }
0x114d   :  { %v2970_v46 = vmul.f32 -1.442695, %v1170_v5  ;;  %v1169_v7 = vadd.f32 %v1164_v6, %v4211_v57  ;;  %v2972_v57 = vld [vmem:[%s4805_s0 + $0x48] sm:$0xff] }
0x114e   :  { %v1190_v61 = vpop.permute.xlu1 %1189 }
0x114f   :  { %3560 = vpow2.f32 %v2970_v46  ;;  %v2969_v8 = vmul.f32 -1.442695, %v1169_v7 }
0x1150   :  { %v1188_v15 = vpop.permute.xlu0 %1187 }
0x1151   :  { %3562 = vpow2.f32 %v2969_v8 }
0x115c   :  { %v3561_v56 = vpop.eup %3560 }
0x115d   :  { %v1178_v58 = vadd.f32 1.0, %v3561_v56 }
0x115e   :  { %v3563_v59 = vpop.eup %3562 }
0x115f   :  { %3564 = vrcp.f32 %v1178_v58  ;;  %v1177_v2 = vadd.f32 1.0, %v3563_v59 }
0x1161   :  { %3566 = vrcp.f32 %v1177_v2 }
0x116c   :  { %v3565_v60 = vpop.eup %3564 }
0x116d   :  { %v4258_v63 = vmul.f32 %v3565_v60, %v1190_v61 }
0x116e   :  { %v3567_v10 = vpop.eup %3566 }
0x116f   :  { %v4260_v9 = vmul.f32 %v3567_v10, %v1188_v15  ;;  %1202 = vrot.lane.b32.xlu1 %v4258_v63, %s3807_s25 }
0x1171   :  { %1200 = vrot.lane.b32.xlu0 %v4260_v9, %s3807_s25 }
0x11e1   :  { %v1203_v53 = vpop.permute.xlu1 %1202 }
0x11e2   :  { %v1207_v19 = vsel %vm38_vm0, %v2972_v57, %v1203_v53 }
0x11e3   :  { %3288 = vmatprep.subr.mxu1 %v1207_v19  ;;  %v1201_v14 = vpop.permute.xlu0 %1200 }
0x11e4   :  { %3289 = vmatpush3.msra.mxu1 %v1207_v19  ;;  %v1206_v20 = vsel %vm38_vm0, %v2971_v18, %v1201_v14 }
0x11e5   :  { %3290 = vmatprep.subr.mxu1 %v1206_v20 }
0x11e6   :  { %3291 = vmatpush3.msra.mxu1 %v1206_v20 }
0x11e7   :  { %3293 = vmatmul.mubr.msk.f32.vlgmr.msra.gmra.mxu1 %vm41_vm1, %v4277_v21  ;;  %3295 = vmatprep.subr.mxu1 %v4284_v22 }
0x11e8   :  { %3296 = vmatpush3.msra.mxu1 %v4284_v22 }
0x11e9   :  { %3297 = vmatprep.subr.mxu1 %v4291_v41 }
0x11ea   :  { %3298 = vmatpush3.msra.mxu1 %v4291_v41 }
0x11eb   :  { %3299 = vmatprep.subr.mxu1 %v4298_v23 }
0x11ec   :  { %3300 = vmatpush3.msra.mxu1 %v4298_v23 }
0x11ed   :  { %3301 = vmatprep.subr.mxu1 %v4305_v44 }
0x11ee   :  { %3302 = vmatpush3.msra.mxu1 %v4305_v44 }
0x11ef   :  { %3303 = vmatprep.subr.mxu1 %v4312_v26 }
0x11f0   :  { %3304 = vmatpush3.msra.mxu1 %v4312_v26 }
0x11f1   :  { %3305 = vmatprep.subr.mxu1 %v4319_v24 }
0x11f2   :  { %3306 = vmatpush3.msra.mxu1 %v4319_v24 }
0x12a7   :  { %v3294_v28 = vpop.f32.mrf.mxu1 }
0x12a8   :  { %1287 = vrot.lane.b32.xlu0 %v3294_v28, %s3801_s19 }
0x12a9   :  { %v1274_v31 = vpop.f32.mrf.mxu1 }
0x12aa   :  { %1285 = vrot.lane.b32.xlu1 %v1274_v31, %s3801_s19 }
0x131a   :  { %v1288_v34 = vpop.permute.xlu0 %1287 }
0x131b   :  { %v1292_v37 = vsel %vm131_vm2, %v1207_v19, %v1288_v34 }
0x131c   :  { %v1286_v35 = vpop.permute.xlu1 %1285 }
0x131d   :  { %v1291_v27 = vsel %vm131_vm2, %v1206_v20, %v1286_v35 }
0x131e   :  { %3307 = vmatprep.mubr.msk.f32.mxu1 %vm138_vm3, %v1291_v27 }
0x131f   :  { %3308 = vmatmul.mubr.msk.f32.vlgmr.msra.gmra.mxu1 %vm138_vm3, %v1292_v37 }
0x1320   :  { %3336 = vmatprep.mubr.msk.f32.mxu1 %vm41_vm1, %v4332_v29 }
0x13df   :  { %v3309_v39 = vpop.f32.mrf.mxu1 }
0x13e0   :  { %v4337_v40 = vadd.f32 %v3309_v39, %v3937_v25 }
0x13e1   :  { %v1365_v42 = vpop.f32.mrf.mxu1 }
0x13e2   :  { %3568 = vtanh.f32 %v4337_v40  ;;  %v4341_v43 = vadd.f32 %v1365_v42, %v3937_v25  ;;  %v1377_v17 = vadd.f32 %v1375_v50, %v4337_v40 }
0x13e4   :  { %3570 = vtanh.f32 %v4341_v43  ;;  %v1376_v55 = vadd.f32 %v1374_v13, %v4341_v43  ;;  %v2978_v3 = vmul.f32 -1.442695, %v1377_v17 }
0x13e6   :  { %v2977_v4 = vmul.f32 -1.442695, %v1376_v55  ;;  %3572 = vpow2.f32 %v2978_v3 }
0x13e8   :  { %3574 = vpow2.f32 %v2977_v4 }
0x13ef   :  { %v3569_v62 = vpop.eup %3568 }
0x13f0   :  { %1422 = vrot.lane.b32.xlu1 %v3569_v62, %s3803_s21 }
0x13f1   :  { %v3571_v1 = vpop.eup %3570 }
0x13f2   :  { %1420 = vrot.lane.b32.xlu0 %v3571_v1, %s3803_s21 }
0x13f3   :  { %v3573_v5 = vpop.eup %3572 }
0x13f4   :  { %1396 = vrot.lane.b32.xlu1 %v1391_v48, %s3802_s20  ;;  %v1385_v46 = vadd.f32 1.0, %v3573_v5 }
0x13f5   :  { %v3575_v6 = vpop.eup %3574 }
0x13f6   :  { %1394 = vrot.lane.b32.xlu0 %v1390_v32, %s3802_s20  ;;  %v1384_v7 = vadd.f32 1.0, %v3575_v6  ;;  %3576 = vrcp.f32 %v1385_v46 }
0x13f8   :  { %3578 = vrcp.f32 %v1384_v7 }
0x1403   :  { %v3577_v8 = vpop.eup %3576 }
0x1405   :  { %v3579_v58 = vpop.eup %3578 }
0x1462   :  { %v1423_v56 = vpop.permute.xlu1 %1422 }
0x1463   :  { %v1427_v45 = vmul.f32 %v3577_v8, %v1423_v56 }
0x1464   :  { %v1421_v59 = vpop.permute.xlu0 %1420 }
0x1465   :  { %v1426_v54 = vmul.f32 %v3579_v58, %v1421_v59  ;;  %1432 = vrot.lane.b32.xlu1 %v1427_v45, %s3802_s20 }
0x1466   :  { %v1397_v2 = vpop.permute.xlu1 %1396 }
0x1467   :  { %1430 = vrot.lane.b32.xlu0 %v1426_v54, %s3802_s20  ;;  %v1401_v61 = vadd.f32 %v1397_v2, %v4337_v40  ;;  %v2983_v54 = vld [vmem:[%s4805_s0 + $0x50] sm:$0xff] }
0x1468   :  { %v1395_v60 = vpop.permute.xlu0 %1394 }
0x1469   :  { %v1400_v10 = vadd.f32 %v1395_v60, %v4341_v43  ;;  %v2980_v15 = vmul.f32 -1.442695, %v1401_v61 }
0x146b   :  { %v2979_v57 = vmul.f32 -1.442695, %v1400_v10  ;;  %3580 = vpow2.f32 %v2980_v15 }
0x146d   :  { %3582 = vpow2.f32 %v2979_v57 }
0x1478   :  { %v3581_v53 = vpop.eup %3580 }
0x1479   :  { %v1409_v19 = vadd.f32 1.0, %v3581_v53 }
0x147a   :  { %v3583_v18 = vpop.eup %3582 }
0x147b   :  { %v1408_v14 = vadd.f32 1.0, %v3583_v18  ;;  %3584 = vrcp.f32 %v1409_v19 }
0x147d   :  { %3586 = vrcp.f32 %v1408_v14 }
0x1488   :  { %v3585_v20 = vpop.eup %3584 }
0x1489   :  { %v1417_v31 = vmul.f32 %v3585_v20, %v4233_v49 }
0x148a   :  { %v3587_v28 = vpop.eup %3586 }
0x148b   :  { %v1416_v27 = vmul.f32 %v3587_v28, %v4236_v52 }
0x14d7   :  { %v1433_v34 = vpop.permute.xlu1 %1432 }
0x14d8   :  { %v4363_v35 = vadd.f32 %v1433_v34, %v1417_v31 }
0x14d9   :  { %v1431_v37 = vpop.permute.xlu0 %1430 }
0x14da   :  { %v4366_v39 = vadd.f32 %v1431_v37, %v1416_v27  ;;  %1442 = vrot.lane.b32.xlu1 %v4363_v35, %s3804_s22  ;;  %3588 = vtanh.f32 %v4363_v35 }
0x14dc   :  { %1440 = vrot.lane.b32.xlu0 %v4366_v39, %s3804_s22  ;;  %3590 = vtanh.f32 %v4366_v39 }
0x14e7   :  { %v3589_v1 = vpop.eup %3588 }
0x14e9   :  { %v3591_v48 = vpop.eup %3590 }
0x154c   :  { %v4374_v42 = vpop.permute.xlu1 %1442 }
0x154d   :  { %v1447_v49 = vmul.f32 %v4374_v42, %v3972_v12  ;;  %v1678_v37 = vmul.f32 %v4374_v42, %v3922_v16 }
0x154e   :  { %v4378_v62 = vpop.permute.xlu0 %1440 }
0x154f   :  { %v1446_v52 = vmul.f32 %v4378_v62, %v3972_v12  ;;  %1452 = vrot.lane.b32.xlu1 %v1447_v49, %s3805_s23  ;;  %v1662_v49 = vmul.f32 %v4374_v42, %v3951_v33 }
0x1551   :  { %1450 = vrot.lane.b32.xlu0 %v1446_v52, %s3805_s23  ;;  %v1661_v52 = vmul.f32 %v4378_v62, %v3951_v33 }
0x1553   :  { %1476 = vrot.lane.b32.xlu1 %v3589_v1, %s3806_s24 }
0x1555   :  { %1474 = vrot.lane.b32.xlu0 %v3591_v48, %s3806_s24 }
0x15c1   :  { %v1453_v32 = vpop.permute.xlu1 %1452 }
0x15c2   :  { %v1457_v50 = vadd.f32 %v1453_v32, %v4337_v40 }
0x15c3   :  { %v1451_v13 = vpop.permute.xlu0 %1450 }
0x15c4   :  { %v2982_v17 = vmul.f32 -1.442695, %v1457_v50  ;;  %v1456_v55 = vadd.f32 %v1451_v13, %v4341_v43  ;;  %v2984_v43 = vld [vmem:[%s4805_s0 + $0x58] sm:$0xff] }
0x15c5   :  { %v1477_v8 = vpop.permute.xlu1 %1476 }
0x15c6   :  { %3592 = vpow2.f32 %v2982_v17  ;;  %v2981_v3 = vmul.f32 -1.442695, %v1456_v55 }
0x15c7   :  { %v1475_v58 = vpop.permute.xlu0 %1474 }
0x15c8   :  { %3594 = vpow2.f32 %v2981_v3 }
0x15d3   :  { %v3593_v4 = vpop.eup %3592 }
0x15d4   :  { %v1465_v5 = vadd.f32 1.0, %v3593_v4 }
0x15d5   :  { %v3595_v6 = vpop.eup %3594 }
0x15d6   :  { %3596 = vrcp.f32 %v1465_v5  ;;  %v1464_v46 = vadd.f32 1.0, %v3595_v6 }
0x15d8   :  { %3598 = vrcp.f32 %v1464_v46 }
0x15e3   :  { %v3597_v7 = vpop.eup %3596 }
0x15e4   :  { %v4388_v56 = vmul.f32 %v3597_v7, %v1477_v8 }
0x15e5   :  { %v3599_v45 = vpop.eup %3598 }
0x15e6   :  { %v4390_v40 = vmul.f32 %v3599_v45, %v1475_v58  ;;  %1489 = vrot.lane.b32.xlu1 %v4388_v56, %s3807_s25 }
0x15e8   :  { %1487 = vrot.lane.b32.xlu0 %v4390_v40, %s3807_s25 }
0x1658   :  { %v1490_v59 = vpop.permute.xlu1 %1489 }
0x1659   :  { %v1494_v2 = vsel %vm38_vm0, %v2984_v43, %v1490_v59 }
0x165a   :  { %3310 = vmatprep.subr.mxu0 %v1494_v2  ;;  %v1488_v60 = vpop.permute.xlu0 %1487 }
0x165b   :  { %3311 = vmatpush3.msra.mxu0 %v1494_v2  ;;  %v1493_v61 = vsel %vm38_vm0, %v2983_v54, %v1488_v60 }
0x165c   :  { %3312 = vmatprep.subr.mxu0 %v1493_v61 }
0x165d   :  { %3313 = vmatpush3.msra.mxu0 %v1493_v61 }
0x165e   :  { %3315 = vmatmul.mubr.msk.f32.vlgmr.msra.gmra.mxu0 %vm41_vm1, %v4277_v21  ;;  %3317 = vmatprep.subr.mxu0 %v4284_v22 }
0x165f   :  { %3318 = vmatpush3.msra.mxu0 %v4284_v22 }
0x1660   :  { %3319 = vmatprep.subr.mxu0 %v4291_v41 }
0x1661   :  { %3320 = vmatpush3.msra.mxu0 %v4291_v41 }
0x1662   :  { %3321 = vmatprep.subr.mxu0 %v4298_v23 }
0x1663   :  { %3322 = vmatpush3.msra.mxu0 %v4298_v23 }
0x1664   :  { %3323 = vmatprep.subr.mxu0 %v4305_v44 }
0x1665   :  { %3324 = vmatpush3.msra.mxu0 %v4305_v44 }
0x1666   :  { %3325 = vmatprep.subr.mxu0 %v4312_v26 }
0x1667   :  { %3326 = vmatpush3.msra.mxu0 %v4312_v26 }
0x1668   :  { %3327 = vmatprep.subr.mxu0 %v4319_v24 }
0x1669   :  { %3328 = vmatpush3.msra.mxu0 %v4319_v24 }
0x171e   :  { %v3316_v10 = vpop.f32.mrf.mxu0 }
0x171f   :  { %1574 = vrot.lane.b32.xlu0 %v3316_v10, %s3801_s19 }
0x1720   :  { %v1561_v15 = vpop.f32.mrf.mxu0 }
0x1721   :  { %1572 = vrot.lane.b32.xlu1 %v1561_v15, %s3801_s19 }
0x1791   :  { %v1575_v57 = vpop.permute.xlu0 %1574 }
0x1792   :  { %v1579_v19 = vsel %vm131_vm2, %v1494_v2, %v1575_v57 }
0x1793   :  { %v1573_v53 = vpop.permute.xlu1 %1572 }
0x1794   :  { %v1578_v18 = vsel %vm131_vm2, %v1493_v61, %v1573_v53 }
0x1795   :  { %3329 = vmatprep.mubr.msk.f32.mxu0 %vm138_vm3, %v1578_v18 }
0x1796   :  { %3330 = vmatmul.mubr.msk.f32.vlgmr.msra.gmra.mxu0 %vm138_vm3, %v1579_v19 }
0x1797   :  { %3358 = vmatprep.mubr.msk.f32.mxu0 %vm41_vm1, %v4332_v29  ;;  %v1677_v29 = vmul.f32 %v4378_v62, %v3922_v16 }
0x1856   :  { %v3331_v14 = vpop.f32.mrf.mxu0 }
0x1857   :  { %v4427_v20 = vadd.f32 %v3331_v14, %v3937_v25 }
0x1858   :  { %v1652_v28 = vpop.f32.mrf.mxu0 }
0x1859   :  { %3600 = vtanh.f32 %v4427_v20  ;;  %v4431_v31 = vadd.f32 %v1652_v28, %v3937_v25  ;;  %v1664_v1 = vadd.f32 %v1662_v49, %v4427_v20 }
0x185b   :  { %3602 = vtanh.f32 %v4431_v31  ;;  %v1663_v48 = vadd.f32 %v1661_v52, %v4431_v31  ;;  %v2990_v32 = vmul.f32 -1.442695, %v1664_v1 }
0x185d   :  { %v2989_v50 = vmul.f32 -1.442695, %v1663_v48  ;;  %3604 = vpow2.f32 %v2990_v32 }
0x185f   :  { %3606 = vpow2.f32 %v2989_v50 }
0x1866   :  { %v3601_v34 = vpop.eup %3600 }
0x1867   :  { %1709 = vrot.lane.b32.xlu1 %v3601_v34, %s3803_s21 }
0x1868   :  { %v3603_v27 = vpop.eup %3602 }
0x1869   :  { %1707 = vrot.lane.b32.xlu0 %v3603_v27, %s3803_s21 }
0x186a   :  { %v3605_v13 = vpop.eup %3604 }
0x186b   :  { %1683 = vrot.lane.b32.xlu1 %v1678_v37, %s3802_s20  ;;  %v1672_v55 = vadd.f32 1.0, %v3605_v13 }
0x186c   :  { %v3607_v17 = vpop.eup %3606 }
0x186d   :  { %1681 = vrot.lane.b32.xlu0 %v1677_v29, %s3802_s20  ;;  %v1671_v3 = vadd.f32 1.0, %v3607_v17  ;;  %3608 = vrcp.f32 %v1672_v55 }
0x186f   :  { %3610 = vrcp.f32 %v1671_v3 }
0x187a   :  { %v3609_v4 = vpop.eup %3608 }
0x187c   :  { %v3611_v6 = vpop.eup %3610 }
0x18d9   :  { %v1710_v5 = vpop.permute.xlu1 %1709 }
0x18da   :  { %v1714_v42 = vmul.f32 %v3609_v4, %v1710_v5 }
0x18db   :  { %v1708_v46 = vpop.permute.xlu0 %1707 }
0x18dc   :  { %v1713_v62 = vmul.f32 %v3611_v6, %v1708_v46  ;;  %1719 = vrot.lane.b32.xlu1 %v1714_v42, %s3802_s20 }
0x18dd   :  { %v1684_v7 = vpop.permute.xlu1 %1683 }
0x18de   :  { %1717 = vrot.lane.b32.xlu0 %v1713_v62, %s3802_s20  ;;  %v1688_v45 = vadd.f32 %v1684_v7, %v4427_v20  ;;  %v2995_v7 = vld [vmem:[%s4805_s0 + $0x60] sm:$0xff] }
0x18df   :  { %v1682_v8 = vpop.permute.xlu0 %1681 }
0x18e0   :  { %v1687_v58 = vadd.f32 %v1682_v8, %v4431_v31  ;;  %v2992_v43 = vmul.f32 -1.442695, %v1688_v45 }
0x18e2   :  { %v2991_v59 = vmul.f32 -1.442695, %v1687_v58  ;;  %3612 = vpow2.f32 %v2992_v43 }
0x18e4   :  { %3614 = vpow2.f32 %v2991_v59 }
0x18ef   :  { %v3613_v54 = vpop.eup %3612 }
0x18f0   :  { %v1696_v60 = vadd.f32 1.0, %v3613_v54 }
0x18f1   :  { %v3615_v2 = vpop.eup %3614 }
0x18f2   :  { %v1695_v61 = vadd.f32 1.0, %v3615_v2  ;;  %3616 = vrcp.f32 %v1696_v60 }
0x18f4   :  { %3618 = vrcp.f32 %v1695_v61 }
0x18ff   :  { %v3617_v10 = vpop.eup %3616 }
0x1900   :  { %v1704_v57 = vmul.f32 %v3617_v10, %v4363_v35 }
0x1901   :  { %v3619_v15 = vpop.eup %3618 }
0x1902   :  { %v1703_v19 = vmul.f32 %v3619_v15, %v4366_v39 }
0x194e   :  { %v1720_v53 = vpop.permute.xlu1 %1719 }
0x194f   :  { %v4453_v18 = vadd.f32 %v1720_v53, %v1704_v57 }
0x1950   :  { %v1718_v14 = vpop.permute.xlu0 %1717 }
0x1951   :  { %v4456_v28 = vadd.f32 %v1718_v14, %v1703_v19  ;;  %1729 = vrot.lane.b32.xlu1 %v4453_v18, %s3804_s22  ;;  %3620 = vtanh.f32 %v4453_v18 }
0x1953   :  { %1727 = vrot.lane.b32.xlu0 %v4456_v28, %s3804_s22  ;;  %3622 = vtanh.f32 %v4456_v28 }
0x195e   :  { %v3621_v37 = vpop.eup %3620 }
0x1960   :  { %v3623_v29 = vpop.eup %3622 }
0x19c3   :  { %v4464_v34 = vpop.permute.xlu1 %1729 }
0x19c4   :  { %v1734_v35 = vmul.f32 %v4464_v34, %v3972_v12 }
0x19c5   :  { %v4468_v27 = vpop.permute.xlu0 %1727 }
0x19c6   :  { %v1733_v39 = vmul.f32 %v4468_v27, %v3972_v12  ;;  %1739 = vrot.lane.b32.xlu1 %v1734_v35, %s3805_s23  ;;  %v1965_v35 = vmul.f32 %v4464_v34, %v3922_v16 }
0x19c8   :  { %1737 = vrot.lane.b32.xlu0 %v1733_v39, %s3805_s23  ;;  %v1964_v39 = vmul.f32 %v4468_v27, %v3922_v16 }
0x19ca   :  { %1763 = vrot.lane.b32.xlu1 %v3621_v37, %s3806_s24  ;;  %v1949_v37 = vmul.f32 %v4464_v34, %v3951_v33 }
0x19cc   :  { %1761 = vrot.lane.b32.xlu0 %v3623_v29, %s3806_s24  ;;  %v1948_v29 = vmul.f32 %v4468_v27, %v3951_v33 }
0x1a38   :  { %v1740_v49 = vpop.permute.xlu1 %1739 }
0x1a39   :  { %v1744_v52 = vadd.f32 %v1740_v49, %v4427_v20 }
0x1a3a   :  { %v1738_v1 = vpop.permute.xlu0 %1737 }
0x1a3b   :  { %v2994_v48 = vmul.f32 -1.442695, %v1744_v52  ;;  %v1743_v32 = vadd.f32 %v1738_v1, %v4431_v31  ;;  %v2996_v31 = vld [vmem:[%s4805_s0 + $0x68] sm:$0xff] }
0x1a3c   :  { %v1764_v5 = vpop.permute.xlu1 %1763 }
0x1a3d   :  { %3624 = vpow2.f32 %v2994_v48  ;;  %v2993_v50 = vmul.f32 -1.442695, %v1743_v32 }
0x1a3e   :  { %v1762_v46 = vpop.permute.xlu0 %1761 }
0x1a3f   :  { %3626 = vpow2.f32 %v2993_v50 }
0x1a4a   :  { %v3625_v13 = vpop.eup %3624 }
0x1a4b   :  { %v1752_v17 = vadd.f32 1.0, %v3625_v13 }
0x1a4c   :  { %v3627_v55 = vpop.eup %3626 }
0x1a4d   :  { %3628 = vrcp.f32 %v1752_v17  ;;  %v1751_v3 = vadd.f32 1.0, %v3627_v55 }
0x1a4f   :  { %3630 = vrcp.f32 %v1751_v3 }
0x1a5a   :  { %v3629_v4 = vpop.eup %3628 }
0x1a5b   :  { %v4478_v42 = vmul.f32 %v3629_v4, %v1764_v5 }
0x1a5c   :  { %v3631_v6 = vpop.eup %3630 }
0x1a5d   :  { %v4480_v20 = vmul.f32 %v3631_v6, %v1762_v46  ;;  %1776 = vrot.lane.b32.xlu1 %v4478_v42, %s3807_s25 }
0x1a5f   :  { %1774 = vrot.lane.b32.xlu0 %v4480_v20, %s3807_s25 }
0x1acf   :  { %v1777_v62 = vpop.permute.xlu1 %1776 }
0x1ad0   :  { %v1781_v8 = vsel %vm38_vm0, %v2996_v31, %v1777_v62 }
0x1ad1   :  { %3332 = vmatprep.subr.mxu1 %v1781_v8  ;;  %v1775_v45 = vpop.permute.xlu0 %1774 }
0x1ad2   :  { %3333 = vmatpush3.msra.mxu1 %v1781_v8  ;;  %v1780_v58 = vsel %vm38_vm0, %v2995_v7, %v1775_v45 }
0x1ad3   :  { %3334 = vmatprep.subr.mxu1 %v1780_v58 }
0x1ad4   :  { %3335 = vmatpush3.msra.mxu1 %v1780_v58 }
0x1ad5   :  { %3337 = vmatmul.mubr.msk.f32.vlgmr.msra.gmra.mxu1 %vm41_vm1, %v4277_v21  ;;  %3339 = vmatprep.subr.mxu1 %v4284_v22 }
0x1ad6   :  { %3340 = vmatpush3.msra.mxu1 %v4284_v22 }
0x1ad7   :  { %3341 = vmatprep.subr.mxu1 %v4291_v41 }
0x1ad8   :  { %3342 = vmatpush3.msra.mxu1 %v4291_v41 }
0x1ad9   :  { %3343 = vmatprep.subr.mxu1 %v4298_v23 }
0x1ada   :  { %3344 = vmatpush3.msra.mxu1 %v4298_v23 }
0x1adb   :  { %3345 = vmatprep.subr.mxu1 %v4305_v44 }
0x1adc   :  { %3346 = vmatpush3.msra.mxu1 %v4305_v44 }
0x1add   :  { %3347 = vmatprep.subr.mxu1 %v4312_v26 }
0x1ade   :  { %3348 = vmatpush3.msra.mxu1 %v4312_v26 }
0x1adf   :  { %3349 = vmatprep.subr.mxu1 %v4319_v24 }
0x1ae0   :  { %3350 = vmatpush3.msra.mxu1 %v4319_v24 }
0x1b95   :  { %v3338_v43 = vpop.f32.mrf.mxu1 }
0x1b96   :  { %1861 = vrot.lane.b32.xlu0 %v3338_v43, %s3801_s19 }
0x1b97   :  { %v1848_v59 = vpop.f32.mrf.mxu1 }
0x1b98   :  { %1859 = vrot.lane.b32.xlu1 %v1848_v59, %s3801_s19 }
0x1c08   :  { %v1862_v54 = vpop.permute.xlu0 %1861 }
0x1c09   :  { %v1866_v61 = vsel %vm131_vm2, %v1781_v8, %v1862_v54 }
0x1c0a   :  { %v1860_v2 = vpop.permute.xlu1 %1859 }
0x1c0b   :  { %v1865_v60 = vsel %vm131_vm2, %v1780_v58, %v1860_v2 }
0x1c0c   :  { %3351 = vmatprep.mubr.msk.f32.mxu1 %vm138_vm3, %v1865_v60 }
0x1c0d   :  { %3352 = vmatmul.mubr.msk.f32.vlgmr.msra.gmra.mxu1 %vm138_vm3, %v1866_v61 }
0x1ccd   :  { %v3353_v10 = vpop.f32.mrf.mxu1 }
0x1cce   :  { %v4515_v15 = vadd.f32 %v3353_v10, %v3937_v25 }
0x1ccf   :  { %v1939_v57 = vpop.f32.mrf.mxu1 }
0x1cd0   :  { %3632 = vtanh.f32 %v4515_v15  ;;  %v4519_v53 = vadd.f32 %v1939_v57, %v3937_v25  ;;  %v1951_v49 = vadd.f32 %v1949_v37, %v4515_v15 }
0x1cd2   :  { %3634 = vtanh.f32 %v4519_v53  ;;  %v1950_v52 = vadd.f32 %v1948_v29, %v4519_v53  ;;  %v3002_v1 = vmul.f32 -1.442695, %v1951_v49 }
0x1cd4   :  { %v3001_v48 = vmul.f32 -1.442695, %v1950_v52  ;;  %3636 = vpow2.f32 %v3002_v1 }
0x1cd6   :  { %3638 = vpow2.f32 %v3001_v48 }
0x1cdd   :  { %v3633_v19 = vpop.eup %3632 }
0x1cde   :  { %1996 = vrot.lane.b32.xlu1 %v3633_v19, %s3803_s21 }
0x1cdf   :  { %v3635_v14 = vpop.eup %3634 }
0x1ce0   :  { %1994 = vrot.lane.b32.xlu0 %v3635_v14, %s3803_s21 }
0x1ce1   :  { %v3637_v32 = vpop.eup %3636 }
0x1ce2   :  { %1970 = vrot.lane.b32.xlu1 %v1965_v35, %s3802_s20  ;;  %v1959_v13 = vadd.f32 1.0, %v3637_v32 }
0x1ce3   :  { %v3639_v50 = vpop.eup %3638 }
0x1ce4   :  { %1968 = vrot.lane.b32.xlu0 %v1964_v39, %s3802_s20  ;;  %v1958_v17 = vadd.f32 1.0, %v3639_v50  ;;  %3640 = vrcp.f32 %v1959_v13 }
0x1ce6   :  { %3642 = vrcp.f32 %v1958_v17 }
0x1cf1   :  { %v3641_v55 = vpop.eup %3640 }
0x1cf3   :  { %v3643_v4 = vpop.eup %3642 }
0x1d50   :  { %v1997_v3 = vpop.permute.xlu1 %1996 }
0x1d51   :  { %v2001_v34 = vmul.f32 %v3641_v55, %v1997_v3 }
0x1d52   :  { %v1995_v5 = vpop.permute.xlu0 %1994 }
0x1d53   :  { %v2000_v27 = vmul.f32 %v3643_v4, %v1995_v5  ;;  %2006 = vrot.lane.b32.xlu1 %v2001_v34, %s3802_s20 }
0x1d54   :  { %v1971_v6 = vpop.permute.xlu1 %1970 }
0x1d55   :  { %2004 = vrot.lane.b32.xlu0 %v2000_v27, %s3802_s20  ;;  %v1975_v31 = vadd.f32 %v1971_v6, %v4515_v15 }
0x1d56   :  { %v1969_v46 = vpop.permute.xlu0 %1968 }
0x1d57   :  { %v1974_v62 = vadd.f32 %v1969_v46, %v4519_v53  ;;  %v3004_v7 = vmul.f32 -1.442695, %v1975_v31  ;;  %v3007_v31 = vld [vmem:[%s4805_s0 + $0x70] sm:$0xff] }
0x1d59   :  { %v3003_v8 = vmul.f32 -1.442695, %v1974_v62  ;;  %3644 = vpow2.f32 %v3004_v7 }
0x1d5b   :  { %3646 = vpow2.f32 %v3003_v8 }
0x1d66   :  { %v3645_v45 = vpop.eup %3644 }
0x1d67   :  { %v1983_v43 = vadd.f32 1.0, %v3645_v45 }
0x1d68   :  { %v3647_v58 = vpop.eup %3646 }
0x1d69   :  { %v1982_v59 = vadd.f32 1.0, %v3647_v58  ;;  %3648 = vrcp.f32 %v1983_v43 }
0x1d6b   :  { %3650 = vrcp.f32 %v1982_v59 }
0x1d76   :  { %v3649_v54 = vpop.eup %3648 }
0x1d77   :  { %v1991_v60 = vmul.f32 %v3649_v54, %v4453_v18 }
0x1d78   :  { %v3651_v2 = vpop.eup %3650 }
0x1d79   :  { %v1990_v57 = vmul.f32 %v3651_v2, %v4456_v28 }
0x1dc5   :  { %v2007_v61 = vpop.permute.xlu1 %2006 }
0x1dc6   :  { %v4541_v10 = vadd.f32 %v2007_v61, %v1991_v60 }
0x1dc7   :  { %v2005_v19 = vpop.permute.xlu0 %2004 }
0x1dc8   :  { %v4544_v14 = vadd.f32 %v2005_v19, %v1990_v57  ;;  %2016 = vrot.lane.b32.xlu1 %v4541_v10, %s3804_s22  ;;  %3652 = vtanh.f32 %v4541_v10 }
0x1dca   :  { %2014 = vrot.lane.b32.xlu0 %v4544_v14, %s3804_s22  ;;  %3654 = vtanh.f32 %v4544_v14 }
0x1dd5   :  { %v3653_v37 = vpop.eup %3652 }
0x1dd7   :  { %v3655_v29 = vpop.eup %3654 }
0x1e3a   :  { %v4552_v35 = vpop.permute.xlu1 %2016 }
0x1e3b   :  { %v2021_v18 = vmul.f32 %v4552_v35, %v3972_v12  ;;  %v2252_v2 = vmul.f32 %v4552_v35, %v3922_v16 }
0x1e3c   :  { %v4556_v39 = vpop.permute.xlu0 %2014 }
0x1e3d   :  { %v2020_v28 = vmul.f32 %v4556_v39, %v3972_v12  ;;  %2026 = vrot.lane.b32.xlu1 %v2021_v18, %s3805_s23  ;;  %v2251_v60 = vmul.f32 %v4556_v39, %v3922_v16  ;;  %v2235_v61 = vmul.f32 %v4556_v39, %v3951_v33 }
0x1e3f   :  { %2024 = vrot.lane.b32.xlu0 %v2020_v28, %s3805_s23 }
0x1e41   :  { %2050 = vrot.lane.b32.xlu1 %v3653_v37, %s3806_s24 }
0x1e43   :  { %2048 = vrot.lane.b32.xlu0 %v3655_v29, %s3806_s24 }
0x1eaf   :  { %v2027_v49 = vpop.permute.xlu1 %2026 }
0x1eb0   :  { %v2031_v52 = vadd.f32 %v2027_v49, %v4515_v15 }
0x1eb1   :  { %v2025_v1 = vpop.permute.xlu0 %2024 }
0x1eb2   :  { %v3006_v48 = vmul.f32 -1.442695, %v2031_v52  ;;  %v2030_v32 = vadd.f32 %v2025_v1, %v4519_v53  ;;  %v3008_v53 = vld [vmem:[%s4805_s0 + $0x78] sm:$0xff] }
0x1eb3   :  { %v2051_v4 = vpop.permute.xlu1 %2050 }
0x1eb4   :  { %3656 = vpow2.f32 %v3006_v48  ;;  %v3005_v50 = vmul.f32 -1.442695, %v2030_v32 }
0x1eb5   :  { %v2049_v6 = vpop.permute.xlu0 %2048 }
0x1eb6   :  { %3658 = vpow2.f32 %v3005_v50 }
0x1ec1   :  { %v3657_v13 = vpop.eup %3656 }
0x1ec2   :  { %v2039_v17 = vadd.f32 1.0, %v3657_v13 }
0x1ec3   :  { %v3659_v55 = vpop.eup %3658 }
0x1ec4   :  { %3660 = vrcp.f32 %v2039_v17  ;;  %v2038_v3 = vadd.f32 1.0, %v3659_v55 }
0x1ec6   :  { %3662 = vrcp.f32 %v2038_v3 }
0x1ed1   :  { %v3661_v34 = vpop.eup %3660 }
0x1ed2   :  { %v4566_v5 = vmul.f32 %v3661_v34, %v2051_v4 }
0x1ed3   :  { %v3663_v27 = vpop.eup %3662 }
0x1ed4   :  { %v4568_v15 = vmul.f32 %v3663_v27, %v2049_v6  ;;  %2063 = vrot.lane.b32.xlu1 %v4566_v5, %s3807_s25 }
0x1ed6   :  { %2061 = vrot.lane.b32.xlu0 %v4568_v15, %s3807_s25 }
0x1f46   :  { %v2064_v46 = vpop.permute.xlu1 %2063 }
0x1f47   :  { %v2068_v62 = vsel %vm38_vm0, %v3008_v53, %v2064_v46 }
0x1f48   :  { %3354 = vmatprep.subr.mxu0 %v2068_v62  ;;  %v2062_v7 = vpop.permute.xlu0 %2061 }
0x1f49   :  { %3355 = vmatpush3.msra.mxu0 %v2068_v62  ;;  %v2067_v8 = vsel %vm38_vm0, %v3007_v31, %v2062_v7 }
0x1f4a   :  { %3356 = vmatprep.subr.mxu0 %v2067_v8 }
0x1f4b   :  { %3357 = vmatpush3.msra.mxu0 %v2067_v8 }
0x1f4c   :  { %3359 = vmatmul.mubr.msk.f32.vlgmr.msra.gmra.mxu0 %vm41_vm1, %v4277_v21  ;;  %3361 = vmatprep.subr.mxu0 %v4284_v22 }
0x1f4d   :  { %3362 = vmatpush3.msra.mxu0 %v4284_v22 }
0x1f4e   :  { %3363 = vmatprep.subr.mxu0 %v4291_v41 }
0x1f4f   :  { %3364 = vmatpush3.msra.mxu0 %v4291_v41 }
0x1f50   :  { %3365 = vmatprep.subr.mxu0 %v4298_v23 }
0x1f51   :  { %3366 = vmatpush3.msra.mxu0 %v4298_v23 }
0x1f52   :  { %3367 = vmatprep.subr.mxu0 %v4305_v44 }
0x1f53   :  { %3368 = vmatpush3.msra.mxu0 %v4305_v44 }
0x1f54   :  { %3369 = vmatprep.subr.mxu0 %v4312_v26 }
0x1f55   :  { %3370 = vmatpush3.msra.mxu0 %v4312_v26 }
0x1f56   :  { %3371 = vmatprep.subr.mxu0 %v4319_v24 }
0x1f57   :  { %3372 = vmatpush3.msra.mxu0 %v4319_v24 }
0x200c   :  { %v3360_v21 = vpop.f32.mrf.mxu0 }
0x200d   :  { %2148 = vrot.lane.b32.xlu0 %v3360_v21, %s3801_s19 }
0x200e   :  { %v2135_v22 = vpop.f32.mrf.mxu0 }
0x200f   :  { %2146 = vrot.lane.b32.xlu1 %v2135_v22, %s3801_s19 }
0x207f   :  { %v2149_v41 = vpop.permute.xlu0 %2148 }
0x2080   :  { %v2153_v44 = vsel %vm131_vm2, %v2068_v62, %v2149_v41  ;;  %v32_v41 = vld [vmem:[%s4809_s3 + $0x8] sm:$0xff] }
0x2081   :  { %v2147_v23 = vpop.permute.xlu1 %2146  ;;  %3376 = vmatprep.subr.mxu1 %v32_v41 }
0x2082   :  { %v2152_v45 = vsel %vm131_vm2, %v2067_v8, %v2147_v23  ;;  %3377 = vmatpush3.msra.mxu1 %v32_v41 }
0x2083   :  { %3373 = vmatprep.mubr.msk.f32.mxu0 %vm138_vm3, %v2152_v45 }
0x2084   :  { %3374 = vmatmul.mubr.msk.f32.vlgmr.msra.gmra.mxu0 %vm138_vm3, %v2153_v44 }
0x2144   :  { %v3375_v26 = vpop.f32.mrf.mxu0 }
0x2145   :  { %v4603_v58 = vadd.f32 %v3375_v26, %v3937_v25 }
0x2146   :  { %v2226_v24 = vpop.f32.mrf.mxu0 }
0x2147   :  { %3664 = vtanh.f32 %v4603_v58  ;;  %v4607_v43 = vadd.f32 %v2226_v24, %v3937_v25  ;;  %v2236_v25 = vmul.f32 %v4552_v35, %v3951_v33 }
0x2149   :  { %3666 = vtanh.f32 %v4607_v43  ;;  %v2238_v57 = vadd.f32 %v2236_v25, %v4603_v58  ;;  %v2237_v19 = vadd.f32 %v2235_v61, %v4607_v43 }
0x214b   :  { %v3014_v18 = vmul.f32 -1.442695, %v2238_v57  ;;  %v3013_v28 = vmul.f32 -1.442695, %v2237_v19 }
0x214d   :  { %3668 = vpow2.f32 %v3014_v18 }
0x214e   :  { %3670 = vpow2.f32 %v3013_v28 }
0x2154   :  { %v3665_v59 = vpop.eup %3664 }
0x2155   :  { %2283 = vrot.lane.b32.xlu0 %v3665_v59, %s3803_s21 }
0x2156   :  { %v3667_v54 = vpop.eup %3666 }
0x2157   :  { %2281 = vrot.lane.b32.xlu1 %v3667_v54, %s3803_s21 }
0x2159   :  { %2257 = vrot.lane.b32.xlu0 %v2252_v2, %s3802_s20 }
0x215a   :  { %v3669_v37 = vpop.eup %3668 }
0x215b   :  { %2255 = vrot.lane.b32.xlu1 %v2251_v60, %s3802_s20  ;;  %v3671_v16 = vpop.eup %3670  ;;  %v2246_v29 = vadd.f32 1.0, %v3669_v37 }
0x215c   :  { %v2245_v49 = vadd.f32 1.0, %v3671_v16 }
0x215d   :  { %3672 = vrcp.f32 %v2246_v29 }
0x215e   :  { %3674 = vrcp.f32 %v2245_v49 }
0x216a   :  { %v3673_v52 = vpop.eup %3672 }
0x216b   :  { %v3675_v48 = vpop.eup %3674 }
0x21c7   :  { %v2284_v1 = vpop.permute.xlu0 %2283 }
0x21c8   :  { %v2288_v35 = vmul.f32 %v3673_v52, %v2284_v1 }
0x21c9   :  { %v2282_v32 = vpop.permute.xlu1 %2281 }
0x21ca   :  { %v2287_v33 = vmul.f32 %v3675_v48, %v2282_v32  ;;  %2293 = vrot.lane.b32.xlu0 %v2288_v35, %s3802_s20 }
0x21cb   :  { %v2258_v39 = vpop.permute.xlu0 %2257 }
0x21cc   :  { %2291 = vrot.lane.b32.xlu1 %v2287_v33, %s3802_s20  ;;  %v2262_v13 = vadd.f32 %v2258_v39, %v4603_v58 }
0x21cd   :  { %v2256_v50 = vpop.permute.xlu1 %2255 }
0x21ce   :  { %v2261_v17 = vadd.f32 %v2256_v50, %v4607_v43  ;;  %v3016_v55 = vmul.f32 -1.442695, %v2262_v13 }
0x21d0   :  { %v3015_v3 = vmul.f32 -1.442695, %v2261_v17  ;;  %3676 = vpow2.f32 %v3016_v55 }
0x21d2   :  { %3678 = vpow2.f32 %v3015_v3 }
0x21dd   :  { %v3677_v34 = vpop.eup %3676 }
0x21de   :  { %v2270_v27 = vadd.f32 1.0, %v3677_v34 }
0x21df   :  { %v3679_v4 = vpop.eup %3678 }
0x21e0   :  { %v2269_v6 = vadd.f32 1.0, %v3679_v4  ;;  %3680 = vrcp.f32 %v2270_v27 }
0x21e2   :  { %3682 = vrcp.f32 %v2269_v6  ;;  %v34_v6 = vld [vmem:[%s4810_s4 + $0x8] sm:$0x3] }
0x21e3   :  { %3404 = vmatprep.subr.msk.mxu0 %vm2657_vm4, %v34_v6 }
0x21e4   :  { %3405 = vmatpush3.msk.msra.mxu0 %vm2657_vm4, %v34_v6 }
0x21ed   :  { %v3681_v53 = vpop.eup %3680 }
0x21ee   :  { %v2278_v31 = vmul.f32 %v3681_v53, %v4541_v10  ;;  %v31_v10 = vld [vmem:[%s4809_s3] sm:$0xff]  ;;  %s3808_s3 = smov 80  }
0x21ef   :  { %v3683_v46 = vpop.eup %3682  ;;  %3378 = vmatprep.subr.mxu1 %v31_v10  ;;  %v33_v53 = vld [vmem:[%s4810_s4] sm:$0xff] }
0x21f0   :  { %v2277_v8 = vmul.f32 %v3683_v46, %v4544_v14  ;;  %3379 = vmatpush3.msra.mxu1 %v31_v10  ;;  %3406 = vmatprep.subr.mxu0 %v33_v53 }
0x21f1   :  { %3407 = vmatpush3.msra.mxu0 %v33_v53 }
0x223c   :  { %v2294_v62 = vpop.permute.xlu0 %2293 }
0x223d   :  { %v2298_v7 = vadd.f32 %v2294_v62, %v2278_v31  ;;  %v2361_v62 = vsub.s32 4, %v3912_v11 }
0x223e   :  { %v2292_v21 = vpop.permute.xlu1 %2291 }
0x223f   :  { %v2297_v22 = vadd.f32 %v2292_v21, %v2277_v8  ;;  %2303 = vrot.lane.b32.xlu0 %v2298_v7, %s3804_s22  ;;  %3684 = vtanh.f32 %v2298_v7  ;;  %v4702_v7 = vld [vmem:[%s4808_s5] sm:$0xff] }
0x2240   :  { %v2362_v8 = vrot.slane %v4702_v7, %v2361_v62 }
0x2241   :  { %2301 = vrot.lane.b32.xlu1 %v2297_v22, %s3804_s22  ;;  %3686 = vtanh.f32 %v2297_v22 }
0x2242   :  { %3688 = vtanh.f32 %v3988_v36 }
0x2243   :  { %3690 = vtanh.f32 %v3992_v38 }
0x2244   :  { %3692 = vtanh.f32 %v4078_v0 }
0x2245   :  { %3694 = vtanh.f32 %v4080_v51 }
0x2246   :  { %3696 = vtanh.f32 %v4168_v47 }
0x2247   :  { %3698 = vtanh.f32 %v4170_v30 }
0x2248   :  { %3700 = vtanh.f32 %v4258_v63 }
0x2249   :  { %3702 = vtanh.f32 %v4260_v9 }
0x224a   :  { %3704 = vtanh.f32 %v4388_v56 }
0x224b   :  { %3706 = vtanh.f32 %v4390_v40 }
0x224c   :  { %v3685_v38 = vpop.eup %3684  ;;  %3708 = vtanh.f32 %v4478_v42 }
0x224d   :  { %3710 = vtanh.f32 %v4480_v20 }
0x224e   :  { %v3687_v0 = vpop.eup %3686  ;;  %3712 = vtanh.f32 %v4566_v5 }
0x224f   :  { %v3689_v44 = vpop.eup %3688  ;;  %3714 = vtanh.f32 %v4568_v15 }
0x22b1   :  { %v2304_v14 = vpop.permute.xlu0 %2303 }
0x22b2   :  { %v2308_v23 = vmul.f32 %v2304_v14, %v3972_v12 }
0x22b3   :  { %v2302_v36 = vpop.permute.xlu1 %2301 }
0x22b4   :  { %v2307_v45 = vmul.f32 %v2302_v36, %v3972_v12  ;;  %2313 = vrot.lane.b32.xlu0 %v2308_v23, %s3805_s23  ;;  %v3691_v12 = vpop.eup %3690 }
0x22b5   :  { %v3693_v51 = vpop.eup %3692 }
0x22b6   :  { %2311 = vrot.lane.b32.xlu1 %v2307_v45, %s3805_s23  ;;  %v3695_v47 = vpop.eup %3694 }
0x22b7   :  { %v3697_v30 = vpop.eup %3696 }
0x22b8   :  { %2337 = vrot.lane.b32.xlu0 %v3685_v38, %s3806_s24  ;;  %v3699_v63 = vpop.eup %3698 }
0x22b9   :  { %v3701_v9 = vpop.eup %3700 }
0x22ba   :  { %2335 = vrot.lane.b32.xlu1 %v3687_v0, %s3806_s24  ;;  %v3703_v56 = vpop.eup %3702 }
0x22bb   :  { %v3705_v40 = vpop.eup %3704 }
0x22bc   :  { %2381 = vrot.lane.b32.xlu0 %v3689_v44, %s3808_s3  ;;  %v3707_v42 = vpop.eup %3706 }
0x22bd   :  { %v3709_v20 = vpop.eup %3708 }
0x22be   :  { %2379 = vrot.lane.b32.xlu1 %v3691_v12, %s3808_s3  ;;  %v3711_v5 = vpop.eup %3710 }
0x22bf   :  { %v3713_v26 = vpop.eup %3712 }
0x22c0   :  { %2385 = vrot.lane.b32.xlu0 %v3693_v51, %s3808_s3  ;;  %v3715_v15 = vpop.eup %3714 }
0x22c2   :  { %2383 = vrot.lane.b32.xlu1 %v3695_v47, %s3808_s3 }
0x22c4   :  { %2389 = vrot.lane.b32.xlu0 %v3697_v30, %s3808_s3 }
0x22c6   :  { %2387 = vrot.lane.b32.xlu1 %v3699_v63, %s3808_s3 }
0x22c8   :  { %2393 = vrot.lane.b32.xlu0 %v3701_v9, %s3808_s3 }
0x22ca   :  { %2391 = vrot.lane.b32.xlu1 %v3703_v56, %s3808_s3 }
0x22cc   :  { %2397 = vrot.lane.b32.xlu0 %v3705_v40, %s3808_s3 }
0x22ce   :  { %2395 = vrot.lane.b32.xlu1 %v3707_v42, %s3808_s3 }
0x22d0   :  { %2401 = vrot.lane.b32.xlu0 %v3709_v20, %s3808_s3 }
0x22d2   :  { %2399 = vrot.lane.b32.xlu1 %v3711_v5, %s3808_s3 }
0x22d4   :  { %2405 = vrot.lane.b32.xlu0 %v3713_v26, %s3808_s3 }
0x22d6   :  { %2403 = vrot.lane.b32.xlu1 %v3715_v15, %s3808_s3 }
0x2326   :  { %v2314_v24 = vpop.permute.xlu0 %2313 }
0x2327   :  { %v2318_v59 = vadd.f32 %v2314_v24, %v4603_v58 }
0x2328   :  { %v2312_v54 = vpop.permute.xlu1 %2311 }
0x2329   :  { %v3018_v2 = vmul.f32 -1.442695, %v2318_v59  ;;  %v2317_v60 = vadd.f32 %v2312_v54, %v4607_v43 }
0x232a   :  { %v2338_v25 = vpop.permute.xlu0 %2337 }
0x232b   :  { %3716 = vpow2.f32 %v3018_v2  ;;  %v3017_v61 = vmul.f32 -1.442695, %v2317_v60 }
0x232c   :  { %v2336_v57 = vpop.permute.xlu1 %2335 }
0x232d   :  { %3718 = vpow2.f32 %v3017_v61 }
0x232e   :  { %v2382_v19 = vpop.permute.xlu0 %2381 }
0x2330   :  { %v2380_v18 = vpop.permute.xlu1 %2379 }
0x2331   :  { %3380 = vmatprep.mubr.msk.f32.mxu1 %vm41_vm1, %v2380_v18 }
0x2332   :  { %v2386_v28 = vpop.permute.xlu0 %2385  ;;  %3381 = vmatmul.mubr.msk.f32.vlgmr.msra.gmra.mxu1 %vm41_vm1, %v2382_v19 }
0x2334   :  { %v2384_v37 = vpop.permute.xlu1 %2383 }
0x2335   :  { %3383 = vmatprep.mubr.msk.f32.mxu1 %vm41_vm1, %v2384_v37 }
0x2336   :  { %v2390_v58 = vpop.permute.xlu0 %2389  ;;  %3384 = vmatmul.mubr.msk.f32.gmra.mxu1 %vm41_vm1, %v2386_v28 }
0x2338   :  { %v3717_v16 = vpop.eup %3716  ;;  %v2388_v43 = vpop.permute.xlu1 %2387 }
0x2339   :  { %v2326_v29 = vadd.f32 1.0, %v3717_v16  ;;  %3386 = vmatprep.mubr.msk.f32.mxu1 %vm41_vm1, %v2388_v43 }
0x233a   :  { %v3719_v49 = vpop.eup %3718  ;;  %v2394_v52 = vpop.permute.xlu0 %2393  ;;  %3387 = vmatmul.mubr.msk.f32.gmra.mxu1 %vm41_vm1, %v2390_v58 }
0x233b   :  { %3720 = vrcp.f32 %v2326_v29  ;;  %v2325_v1 = vadd.f32 1.0, %v3719_v49 }
0x233c   :  { %v2392_v35 = vpop.permute.xlu1 %2391 }
0x233d   :  { %3722 = vrcp.f32 %v2325_v1  ;;  %3389 = vmatprep.mubr.msk.f32.mxu1 %vm41_vm1, %v2392_v35 }
0x233e   :  { %v2398_v48 = vpop.permute.xlu0 %2397  ;;  %3390 = vmatmul.mubr.msk.f32.gmra.mxu1 %vm41_vm1, %v2394_v52 }
0x2340   :  { %v2396_v32 = vpop.permute.xlu1 %2395 }
0x2341   :  { %3392 = vmatprep.mubr.msk.f32.mxu1 %vm41_vm1, %v2396_v32 }
0x2342   :  { %3393 = vmatmul.mubr.msk.f32.gmra.mxu1 %vm41_vm1, %v2398_v48  ;;  %v2402_v33 = vpop.permute.xlu0 %2401 }
0x2344   :  { %v2400_v39 = vpop.permute.xlu1 %2399 }
0x2345   :  { %3395 = vmatprep.mubr.msk.f32.mxu1 %vm41_vm1, %v2400_v39 }
0x2346   :  { %3396 = vmatmul.mubr.msk.f32.gmra.mxu1 %vm41_vm1, %v2402_v33  ;;  %v2406_v55 = vpop.permute.xlu0 %2405 }
0x2348   :  { %v3721_v50 = vpop.eup %3720  ;;  %v2404_v13 = vpop.permute.xlu1 %2403 }
0x2349   :  { %v2342_v17 = vmul.f32 %v3721_v50, %v2338_v25  ;;  %3398 = vmatprep.mubr.msk.f32.mxu1 %vm41_vm1, %v2404_v13  ;;  %v2606_v50 = vsub.s32 5, %v3912_v11 }
0x234a   :  { %v3723_v3 = vpop.eup %3722  ;;  %3399 = vmatmul.mubr.msk.f32.gmra.mxu1 %vm41_vm1, %v2406_v55 }
0x234b   :  { %3724 = vtanh.f32 %v2342_v17  ;;  %v2341_v34 = vmul.f32 %v3723_v3, %v2336_v57  ;;  %v4723_v13 = vrot.slane %v4702_v7, %v2606_v50 }
0x234d   :  { %3726 = vtanh.f32 %v2341_v34 }
0x2358   :  { %v3725_v4 = vpop.eup %3724 }
0x2359   :  { %2409 = vrot.lane.b32.xlu0 %v3725_v4, %s3808_s3 }
0x235a   :  { %v3727_v27 = vpop.eup %3726 }
0x235b   :  { %2407 = vrot.lane.b32.xlu1 %v3727_v27, %s3808_s3 }
0x23cb   :  { %v2410_v31 = vpop.permute.xlu0 %2409 }
0x23cd   :  { %v2408_v46 = vpop.permute.xlu1 %2407 }
0x23ce   :  { %3401 = vmatprep.mubr.msk.f32.mxu1 %vm41_vm1, %v2408_v46 }
0x23cf   :  { %3402 = vmatmul.mubr.msk.f32.gmra.mxu1 %vm41_vm1, %v2410_v31 }
0x23f2   :  { %v3382_v21 = vpop.f32.mrf.mxu1 }
0x23f3   :  { %v2515_v22 = vadd.f32 %v3382_v21, %v2362_v8 }
0x23f4   :  { %v2509_v41 = vpop.f32.mrf.mxu1 }
0x23f5   :  { %v2510_v10 = vadd.f32 %v2509_v41, %v2362_v8  ;;  %v2589_v36 = vmax.f32 %v2515_v22, 0.0 }
0x23f6   :  { %v3385_v14 = vpop.f32.mrf.mxu1 }
0x23f7   :  { %v2588_v23 = vmax.f32 %v2510_v10, 0.0  ;;  %v2525_v45 = vadd.f32 %v3385_v14, %v2362_v8 }
0x23f8   :  { %v2519_v38 = vpop.f32.mrf.mxu1 }
0x23f9   :  { %v2520_v0 = vadd.f32 %v2519_v38, %v2362_v8  ;;  %3408 = vmatprep.mubr.msk.f32.mxu0 %vm2608_vm5, %v2588_v23  ;;  %v2591_v51 = vmax.f32 %v2525_v45, 0.0 }
0x23fa   :  { %v3388_v44 = vpop.f32.mrf.mxu1  ;;  %3409 = vmatmul.mubr.msk.f32.vlgmr.msra.gmra.mxu0 %vm2608_vm5, %v2589_v36 }
0x23fb   :  { %v2590_v12 = vmax.f32 %v2520_v0, 0.0  ;;  %v2535_v47 = vadd.f32 %v3388_v44, %v2362_v8 }
0x23fc   :  { %v2529_v30 = vpop.f32.mrf.mxu1 }
0x23fd   :  { %v2530_v63 = vadd.f32 %v2529_v30, %v2362_v8  ;;  %3411 = vmatprep.mubr.msk.f32.mxu0 %vm2608_vm5, %v2590_v12  ;;  %v2593_v40 = vmax.f32 %v2535_v47, 0.0 }
0x23fe   :  { %v3391_v9 = vpop.f32.mrf.mxu1  ;;  %3412 = vmatmul.mubr.msk.f32.gmra.mxu0 %vm2608_vm5, %v2591_v51 }
0x23ff   :  { %v2592_v56 = vmax.f32 %v2530_v63, 0.0  ;;  %v2545_v42 = vadd.f32 %v3391_v9, %v2362_v8 }
0x2400   :  { %v2539_v20 = vpop.f32.mrf.mxu1 }
0x2401   :  { %v2540_v5 = vadd.f32 %v2539_v20, %v2362_v8  ;;  %3414 = vmatprep.mubr.msk.f32.mxu0 %vm2608_vm5, %v2592_v56  ;;  %v2595_v24 = vmax.f32 %v2545_v42, 0.0 }
0x2402   :  { %v3394_v26 = vpop.f32.mrf.mxu1  ;;  %3415 = vmatmul.mubr.msk.f32.gmra.mxu0 %vm2608_vm5, %v2593_v40 }
0x2403   :  { %v2594_v15 = vmax.f32 %v2540_v5, 0.0  ;;  %v2555_v59 = vadd.f32 %v3394_v26, %v2362_v8 }
0x2404   :  { %v2549_v54 = vpop.f32.mrf.mxu1 }
0x2405   :  { %v2550_v2 = vadd.f32 %v2549_v54, %v2362_v8  ;;  %3417 = vmatprep.mubr.msk.f32.mxu0 %vm2608_vm5, %v2594_v15  ;;  %v2597_v61 = vmax.f32 %v2555_v59, 0.0 }
0x2406   :  { %v3397_v60 = vpop.f32.mrf.mxu1  ;;  %3418 = vmatmul.mubr.msk.f32.gmra.mxu0 %vm2608_vm5, %v2595_v24 }
0x2407   :  { %v2596_v25 = vmax.f32 %v2550_v2, 0.0  ;;  %v2565_v57 = vadd.f32 %v3397_v60, %v2362_v8 }
0x2408   :  { %v2559_v19 = vpop.f32.mrf.mxu1 }
0x2409   :  { %v2560_v18 = vadd.f32 %v2559_v19, %v2362_v8  ;;  %3420 = vmatprep.mubr.msk.f32.mxu0 %vm2608_vm5, %v2596_v25  ;;  %v2599_v58 = vmax.f32 %v2565_v57, 0.0 }
0x240a   :  { %v3400_v28 = vpop.f32.mrf.mxu1  ;;  %3421 = vmatmul.mubr.msk.f32.gmra.mxu0 %vm2608_vm5, %v2597_v61 }
0x240b   :  { %v2598_v37 = vmax.f32 %v2560_v18, 0.0  ;;  %v2575_v16 = vadd.f32 %v3400_v28, %v2362_v8 }
0x240c   :  { %v2569_v43 = vpop.f32.mrf.mxu1 }
0x240d   :  { %v2570_v29 = vadd.f32 %v2569_v43, %v2362_v8  ;;  %3423 = vmatprep.mubr.msk.f32.mxu0 %vm2608_vm5, %v2598_v37  ;;  %v2601_v52 = vmax.f32 %v2575_v16, 0.0 }
0x240e   :  { %3424 = vmatmul.mubr.msk.f32.gmra.mxu0 %vm2608_vm5, %v2599_v58 }
0x240f   :  { %v2600_v49 = vmax.f32 %v2570_v29, 0.0 }
0x2411   :  { %3426 = vmatprep.mubr.msk.f32.mxu0 %vm2608_vm5, %v2600_v49 }
0x2412   :  { %3427 = vmatmul.mubr.msk.f32.gmra.mxu0 %vm2608_vm5, %v2601_v52 }
0x248f   :  { %v3403_v1 = vpop.f32.mrf.mxu1 }
0x2490   :  { %v2585_v35 = vadd.f32 %v3403_v1, %v2362_v8 }
0x2491   :  { %v2579_v48 = vpop.f32.mrf.mxu1 }
0x2492   :  { %v2580_v32 = vadd.f32 %v2579_v48, %v2362_v8  ;;  %v2603_v39 = vmax.f32 %v2585_v35, 0.0 }
0x2494   :  { %v2602_v33 = vmax.f32 %v2580_v32, 0.0 }
0x2496   :  { %3429 = vmatprep.mubr.msk.f32.mxu0 %vm2608_vm5, %v2602_v33 }
0x2497   :  { %3430 = vmatmul.mubr.msk.f32.gmra.mxu0 %vm2608_vm5, %v2603_v39 }
0x24ba   :  { %v3410_v17 = vpop.f32.mrf.mxu0 }
0x24bb   :  { %v2733_v55 = vadd.f32 %v3410_v17, %v4723_v13 }
0x24bc   :  { %v2727_v3 = vpop.f32.mrf.mxu0 }
0x24bd   :  { %v3053_v34 = vmul.f32 -1.442695, %v2733_v55  ;;  %v2728_v4 = vadd.f32 %v2727_v3, %v4723_v13 }
0x24be   :  { %v3413_v27 = vpop.f32.mrf.mxu0 }
0x24bf   :  { %3728 = vpow2.f32 %v3053_v34  ;;  %v3052_v6 = vmul.f32 -1.442695, %v2728_v4  ;;  %v2743_v53 = vadd.f32 %v3413_v27, %v4723_v13 }
0x24c0   :  { %v2737_v46 = vpop.f32.mrf.mxu0 }
0x24c1   :  { %3730 = vpow2.f32 %v3052_v6  ;;  %v3055_v31 = vmul.f32 -1.442695, %v2743_v53  ;;  %v2738_v11 = vadd.f32 %v2737_v46, %v4723_v13 }
0x24c2   :  { %v3416_v62 = vpop.f32.mrf.mxu0 }
0x24c3   :  { %3732 = vpow2.f32 %v3055_v31  ;;  %v3054_v7 = vmul.f32 -1.442695, %v2738_v11  ;;  %v2753_v8 = vadd.f32 %v3416_v62, %v4723_v13 }
0x24c4   :  { %v2747_v21 = vpop.f32.mrf.mxu0 }
0x24c5   :  { %3734 = vpow2.f32 %v3054_v7  ;;  %v3057_v22 = vmul.f32 -1.442695, %v2753_v8  ;;  %v2748_v41 = vadd.f32 %v2747_v21, %v4723_v13 }
0x24c6   :  { %v3419_v10 = vpop.f32.mrf.mxu0 }
0x24c7   :  { %3736 = vpow2.f32 %v3057_v22  ;;  %v3056_v14 = vmul.f32 -1.442695, %v2748_v41  ;;  %v2763_v23 = vadd.f32 %v3419_v10, %v4723_v13 }
0x24c8   :  { %v2757_v36 = vpop.f32.mrf.mxu0 }
0x24c9   :  { %3738 = vpow2.f32 %v3056_v14  ;;  %v3059_v45 = vmul.f32 -1.442695, %v2763_v23  ;;  %v2758_v38 = vadd.f32 %v2757_v36, %v4723_v13 }
0x24ca   :  { %v3422_v0 = vpop.f32.mrf.mxu0 }
0x24cb   :  { %3740 = vpow2.f32 %v3059_v45  ;;  %v3058_v44 = vmul.f32 -1.442695, %v2758_v38  ;;  %v2773_v12 = vadd.f32 %v3422_v0, %v4723_v13 }
0x24cc   :  { %v3729_v51 = vpop.eup %3728  ;;  %v2767_v47 = vpop.f32.mrf.mxu0 }
0x24cd   :  { %v2855_v30 = vadd.f32 1.0, %v3729_v51  ;;  %3742 = vpow2.f32 %v3058_v44  ;;  %v3061_v63 = vmul.f32 -1.442695, %v2773_v12  ;;  %v2768_v9 = vadd.f32 %v2767_v47, %v4723_v13 }
0x24ce   :  { %v3731_v56 = vpop.eup %3730  ;;  %v3425_v40 = vpop.f32.mrf.mxu0 }
0x24cf   :  { %3744 = vrcp.f32 %v2855_v30  ;;  %v2854_v42 = vadd.f32 1.0, %v3731_v56  ;;  %v3060_v20 = vmul.f32 -1.442695, %v2768_v9  ;;  %v2783_v5 = vadd.f32 %v3425_v40, %v4723_v13 }
0x24d0   :  { %v3733_v26 = vpop.eup %3732  ;;  %3746 = vpow2.f32 %v3061_v63  ;;  %v2777_v15 = vpop.f32.mrf.mxu0 }
0x24d1   :  { %3748 = vrcp.f32 %v2854_v42  ;;  %v2857_v24 = vadd.f32 1.0, %v3733_v26  ;;  %v3063_v59 = vmul.f32 -1.442695, %v2783_v5  ;;  %v2778_v54 = vadd.f32 %v2777_v15, %v4723_v13 }
0x24d2   :  { %v3735_v2 = vpop.eup %3734  ;;  %3750 = vpow2.f32 %v3060_v20  ;;  %v3428_v60 = vpop.f32.mrf.mxu0 }
0x24d3   :  { %3752 = vrcp.f32 %v2857_v24  ;;  %v2856_v25 = vadd.f32 1.0, %v3735_v2  ;;  %v3062_v61 = vmul.f32 -1.442695, %v2778_v54  ;;  %v2793_v57 = vadd.f32 %v3428_v60, %v4723_v13 }
0x24d4   :  { %v3737_v19 = vpop.eup %3736  ;;  %3754 = vpow2.f32 %v3063_v59  ;;  %v2787_v18 = vpop.f32.mrf.mxu0 }
0x24d5   :  { %3756 = vrcp.f32 %v2856_v25  ;;  %v2859_v28 = vadd.f32 1.0, %v3737_v19  ;;  %v3065_v37 = vmul.f32 -1.442695, %v2793_v57  ;;  %v2788_v58 = vadd.f32 %v2787_v18, %v4723_v13 }
0x24d6   :  { %v3739_v16 = vpop.eup %3738  ;;  %3758 = vpow2.f32 %v3062_v61 }
0x24d7   :  { %3760 = vrcp.f32 %v2859_v28  ;;  %v2858_v43 = vadd.f32 1.0, %v3739_v16  ;;  %v3064_v29 = vmul.f32 -1.442695, %v2788_v58 }
0x24d8   :  { %v3741_v49 = vpop.eup %3740  ;;  %3762 = vpow2.f32 %v3065_v37 }
0x24d9   :  { %3764 = vrcp.f32 %v2858_v43  ;;  %v2861_v52 = vadd.f32 1.0, %v3741_v49 }
0x24da   :  { %v3743_v1 = vpop.eup %3742  ;;  %3766 = vpow2.f32 %v3064_v29 }
0x24db   :  { %3768 = vrcp.f32 %v2861_v52  ;;  %v2860_v35 = vadd.f32 1.0, %v3743_v1 }
0x24dc   :  { %v3745_v48 = vpop.eup %3744 }
0x24dd   :  { %v3747_v32 = vpop.eup %3746  ;;  %2904 = vst.msk [vmem:[%s4811_s6 + $0x8] sm:$0xff] %vm2902_vm6, %v3745_v48  ;;  %3770 = vrcp.f32 %v2860_v35 }
0x24de   :  { %v3749_v33 = vpop.eup %3748  ;;  %v2863_v39 = vadd.f32 1.0, %v3747_v32 }
0x24df   :  { %v3751_v50 = vpop.eup %3750  ;;  %2903 = vst.msk [vmem:[%s4811_s6] sm:$0xff] %vm2902_vm6, %v3749_v33 }
0x24e0   :  { %v3753_v17 = vpop.eup %3752  ;;  %3772 = vrcp.f32 %v2863_v39  ;;  %v2862_v55 = vadd.f32 1.0, %v3751_v50 }
0x24e1   :  { %v3755_v3 = vpop.eup %3754  ;;  %2906 = vst.msk [vmem:[%s4811_s6 + $0x18] sm:$0xff] %vm2902_vm6, %v3753_v17 }
0x24e2   :  { %v3757_v34 = vpop.eup %3756  ;;  %3774 = vrcp.f32 %v2862_v55  ;;  %v2865_v4 = vadd.f32 1.0, %v3755_v3 }
0x24e3   :  { %v3759_v27 = vpop.eup %3758  ;;  %2905 = vst.msk [vmem:[%s4811_s6 + $0x10] sm:$0xff] %vm2902_vm6, %v3757_v34 }
0x24e4   :  { %v3761_v6 = vpop.eup %3760  ;;  %3776 = vrcp.f32 %v2865_v4  ;;  %v2864_v53 = vadd.f32 1.0, %v3759_v27 }
0x24e5   :  { %v3763_v46 = vpop.eup %3762  ;;  %2908 = vst.msk [vmem:[%s4811_s6 + $0x28] sm:$0xff] %vm2902_vm6, %v3761_v6 }
0x24e6   :  { %v3765_v31 = vpop.eup %3764  ;;  %3778 = vrcp.f32 %v2864_v53  ;;  %v2867_v11 = vadd.f32 1.0, %v3763_v46 }
0x24e7   :  { %v3767_v62 = vpop.eup %3766  ;;  %2907 = vst.msk [vmem:[%s4811_s6 + $0x20] sm:$0xff] %vm2902_vm6, %v3765_v31 }
0x24e8   :  { %v3769_v7 = vpop.eup %3768  ;;  %3780 = vrcp.f32 %v2867_v11  ;;  %v2866_v8 = vadd.f32 1.0, %v3767_v62 }
0x24e9   :  { %2910 = vst.msk [vmem:[%s4811_s6 + $0x38] sm:$0xff] %vm2902_vm6, %v3769_v7 }
0x24ea   :  { %v3771_v21 = vpop.eup %3770  ;;  %3782 = vrcp.f32 %v2866_v8 }
0x24eb   :  { %2909 = vst.msk [vmem:[%s4811_s6 + $0x30] sm:$0xff] %vm2902_vm6, %v3771_v21 }
0x24ed   :  { %v3773_v22 = vpop.eup %3772 }
0x24ee   :  { %2912 = vst.msk [vmem:[%s4811_s6 + $0x48] sm:$0xff] %vm2902_vm6, %v3773_v22 }
0x24ef   :  { %v3775_v41 = vpop.eup %3774 }
0x24f0   :  { %2911 = vst.msk [vmem:[%s4811_s6 + $0x40] sm:$0xff] %vm2902_vm6, %v3775_v41 }
0x24f1   :  { %v3777_v10 = vpop.eup %3776 }
0x24f2   :  { %2914 = vst.msk [vmem:[%s4811_s6 + $0x58] sm:$0xff] %vm2902_vm6, %v3777_v10 }
0x24f3   :  { %v3779_v14 = vpop.eup %3778 }
0x24f4   :  { %2913 = vst.msk [vmem:[%s4811_s6 + $0x50] sm:$0xff] %vm2902_vm6, %v3779_v14 }
0x24f5   :  { %v3781_v23 = vpop.eup %3780 }
0x24f6   :  { %2916 = vst.msk [vmem:[%s4811_s6 + $0x68] sm:$0xff] %vm2902_vm6, %v3781_v23 }
0x24f7   :  { %v3783_v36 = vpop.eup %3782 }
0x24f8   :  { %2915 = vst.msk [vmem:[%s4811_s6 + $0x60] sm:$0xff] %vm2902_vm6, %v3783_v36 }
0x2557   :  { %v3431_v45 = vpop.f32.mrf.mxu0 }
0x2558   :  { %v2803_v38 = vadd.f32 %v3431_v45, %v4723_v13 }
0x2559   :  { %v2797_v0 = vpop.f32.mrf.mxu0 }
0x255a   :  { %v3067_v44 = vmul.f32 -1.442695, %v2803_v38  ;;  %v2798_v12 = vadd.f32 %v2797_v0, %v4723_v13 }
0x255c   :  { %3784 = vpow2.f32 %v3067_v44  ;;  %v3066_v51 = vmul.f32 -1.442695, %v2798_v12 }
0x255e   :  { %3786 = vpow2.f32 %v3066_v51 }
0x2569   :  { %v3785_v47 = vpop.eup %3784 }
0x256a   :  { %v2869_v30 = vadd.f32 1.0, %v3785_v47 }
0x256b   :  { %v3787_v63 = vpop.eup %3786 }
0x256c   :  { %3788 = vrcp.f32 %v2869_v30  ;;  %v2868_v9 = vadd.f32 1.0, %v3787_v63 }
0x256e   :  { %3790 = vrcp.f32 %v2868_v9 }
0x2579   :  { %v3789_v56 = vpop.eup %3788 }
0x257a   :  { %2918 = vst.msk [vmem:[%s4811_s6 + $0x78] sm:$0xff] %vm2902_vm6, %v3789_v56 }
0x257b   :  { %v3791_v40 = vpop.eup %3790 }
0x257c   :  { %2917 = vst.msk [vmem:[%s4811_s6 + $0x70] sm:$0xff] %vm2902_vm6, %v3791_v40 }

</bundles_post_ra>
